<compile_context>
chip_gen: v5e
topology: v5e:2x2
jax: 0.10.0
libtpu: 0.0.40
codegen_flags: <defaults>
</compile_context>

<pallas_src>
import functools

import jax
import jax.numpy as jnp
from jax.experimental import pallas as pl
from jax.experimental.pallas import tpu as pltpu

# layer widths of ANN_2:  input -> 320 -> 160 -> 160 -> 80 -> 20 -> 5 -> 1
MXU_WIDTHS = [320, 160, 160, 80, 20]   # layers 0..4 run on the MXU
NUM_MXU = len(MXU_WIDTHS)
TAIL_WIDTHS = [5, 1]                   # layers 5 (20->5) and 6 (5->1): VPU/XLU tail
OUT = 1
BN_EPS = 1e-5

BIAS_ROWS = 8        # sublane-aligned (5 MXU-layer biases -> pad to 8 rows)
BIAS_LANES = 384     # lane-aligned width (>= 320)
TAIL_ROWS = 8        # rows 0..4: w5^T (5,20); row 5: b5; row 6: w6; row 7: b6
TAIL_LANES = 128


def ann2_kernel(x_ref, w0, w1, w2, w3, w4, bias_ref, tail_ref, out_ref):
    """Fused MLP: 5x MXU (Linear+foldedBN -> ReLU) then VPU tail (20->5->1).

    x_ref      : (TILE_B, D_in)   bf16 (streamed)
    w0..w4     : (K_l, N_l)       bf16, BN already folded in (VMEM-resident)
    bias_ref   : (8, 384)         f32, row l = folded bias of MXU layer l
    tail_ref   : (8, 128)         f32, packed params of the 20->5 and 5->1 layers
    out_ref    : (TILE_B, 1)      f32
    """
    w_refs = (w0, w1, w2, w3, w4)
    h = x_ref[...]                                        # bf16, no extra cast
    for l in range(NUM_MXU):
        width = MXU_WIDTHS[l]
        b = bias_ref[l:l + 1, :width]                     # (1, width) f32
        y = jnp.dot(h, w_refs[l][...],
                    preferred_element_type=jnp.float32)   # MXU, f32 accum
        a = jnp.maximum(y + b, 0.0)                       # bias + ReLU in f32
        # Dropout (eval mode) == identity
        h = a.astype(jnp.bfloat16) if l + 1 < NUM_MXU else a

    # Tail: Linear(20,5)+BN+ReLU then Linear(5,1), kept off the MXU.
    # h is (TILE_B, 20) f32; each output column is a broadcast-mul + lane sum.
    tail = tail_ref[...]                                  # (8, 128) f32
    out = tail[7:8, 0:1]                                  # b_last, broadcasts
    for j in range(5):
        z = jnp.sum(h * tail[j:j + 1, :20], axis=-1, keepdims=True)
        z = z + tail[5:6, j:j + 1]                        # folded bias of layer 5
        out = out + jnp.maximum(z, 0.0) * tail[6:7, j:j + 1]
    out_ref[...] = out


def _tile_b(batch):
    """Batch tile: 1024 for large batches; for moderate batches ~ceil(B/2)
    (multiple of 8, min 8) so the 1-D grid has >= 2 steps and v7x can shard
    the batch axis across both TensorCores."""
    if batch >= 2048:
        return 1024
    half = -(-batch // 2)
    return min(1024, max(8, ((half + 7) // 8) * 8))


def _ann2_forward(x, weights, bias_pack, tail_pack, *, single_buffer_residents):
    """x: (B, D_in) any float dtype; weights: 5 bf16 arrays; packs: f32."""
    batch, d_in = x.shape
    x = x.astype(jnp.bfloat16)                 # stream x in bf16 (free: MXU is bf16)
    tile_b = _tile_b(batch)
    b_pad = pl.cdiv(batch, tile_b) * tile_b
    if b_pad != batch:
        x = jnp.pad(x, ((0, b_pad - batch), (0, 0)))

    def resident(shape):
        if single_buffer_residents:
            return pl.BlockSpec(shape, lambda i: (0, 0),
                                pipeline_mode=pl.Buffered(buffer_count=1))
        return pl.BlockSpec(shape, lambda i: (0, 0))

    in_specs = [pl.BlockSpec((tile_b, d_in), lambda i: (i, 0))]
    in_specs += [resident(w.shape) for w in weights]
    in_specs += [resident(bias_pack.shape), resident(tail_pack.shape)]
    out_specs = pl.BlockSpec((tile_b, OUT), lambda i: (i, 0))

    dims = [d_in] + MXU_WIDTHS + TAIL_WIDTHS
    flops = 2 * b_pad * sum(dims[l] * dims[l + 1] for l in range(len(dims) - 1))
    bytes_accessed = int(
        sum(w.size * w.dtype.itemsize for w in weights)
        + bias_pack.size * 4 + tail_pack.size * 4
        + b_pad * d_in * 2 + b_pad * OUT * 4)

    out = pl.pallas_call(
        ann2_kernel,
        out_shape=jax.ShapeDtypeStruct((b_pad, OUT), jnp.float32),
        grid=(b_pad // tile_b,),
        in_specs=in_specs,
        out_specs=out_specs,
        compiler_params=pltpu.CompilerParams(
            dimension_semantics=("parallel",),
            vmem_limit_bytes=32 * 1024 * 1024),
        cost_estimate=pl.CostEstimate(
            flops=int(flops), transcendentals=0,
            bytes_accessed=bytes_accessed),
    )(x, *weights, bias_pack, tail_pack)
    return out[:batch]


_forward_fast = jax.jit(
    functools.partial(_ann2_forward, single_buffer_residents=True))
_forward_safe = jax.jit(
    functools.partial(_ann2_forward, single_buffer_residents=False))


def ann2_forward(x, weights, bias_pack, tail_pack):
    """Preferred entry point: single-buffered resident weights, with a safe
    fallback (default double-buffering) if pipeline_mode is unsupported."""
    try:
        return jax.block_until_ready(_forward_fast(x, weights, bias_pack, tail_pack))
    except Exception:
        return jax.block_until_ready(_forward_safe(x, weights, bias_pack, tail_pack))


def init_raw_params(key, input_size):
    """Synthetic, deterministic raw params matching ANN_2.__init__ (eval mode)."""
    dims = [input_size, 320, 160, 160, 80, 20, 5, 1]
    n_bn = 6                                   # layers 0..5 have BatchNorm1d
    keys = jax.random.split(key, 6 * n_bn + 2)
    ki = iter(keys)
    raw = []
    for l in range(n_bn):
        fan_in, fan_out = dims[l], dims[l + 1]
        bound = 1.0 / float(fan_in) ** 0.5
        w = jax.random.uniform(next(ki), (fan_in, fan_out), jnp.float32, -bound, bound)
        b = jax.random.uniform(next(ki), (fan_out,), jnp.float32, -bound, bound)
        gamma = 1.0 + 0.1 * jax.random.normal(next(ki), (fan_out,), jnp.float32)
        beta = 0.1 * jax.random.normal(next(ki), (fan_out,), jnp.float32)
        mean = 0.05 * jax.random.normal(next(ki), (fan_out,), jnp.float32)
        var = 0.5 + jnp.abs(jax.random.normal(next(ki), (fan_out,), jnp.float32))
        raw.append((w, b, gamma, beta, mean, var))
    fan_in, fan_out = dims[-2], dims[-1]
    bound = 1.0 / float(fan_in) ** 0.5
    w = jax.random.uniform(next(ki), (fan_in, fan_out), jnp.float32, -bound, bound)
    b = jax.random.uniform(next(ki), (fan_out,), jnp.float32, -bound, bound)
    raw.append((w, b))
    return raw


def fold_params(raw):
    """Fold eval-mode BN into the Linears; bf16 MXU weights; pack biases + tail."""
    weights = []
    bias_pack = jnp.zeros((BIAS_ROWS, BIAS_LANES), jnp.float32)
    for l in range(NUM_MXU):
        w, b, gamma, beta, mean, var = raw[l]
        scale = gamma / jnp.sqrt(var + BN_EPS)
        shift = beta - mean * scale
        weights.append((w * scale[None, :]).astype(jnp.bfloat16))
        bias_pack = bias_pack.at[l, :MXU_WIDTHS[l]].set(b * scale + shift)

    tail_pack = jnp.zeros((TAIL_ROWS, TAIL_LANES), jnp.float32)
    w5, b5, g5, be5, m5, v5 = raw[NUM_MXU]        # Linear(20,5) + BN
    s5 = g5 / jnp.sqrt(v5 + BN_EPS)
    sh5 = be5 - m5 * s5
    tail_pack = tail_pack.at[0:5, :20].set((w5 * s5[None, :]).T)
    tail_pack = tail_pack.at[5, :5].set(b5 * s5 + sh5)
    w6, b6 = raw[-1]                              # Linear(5,1), no BN
    tail_pack = tail_pack.at[6, :5].set(w6[:, 0])
    tail_pack = tail_pack.at[7, 0].set(b6[0])
    return weights, bias_pack, tail_pack


def ann2_reference_folded(x, weights, bias_pack, tail_pack):
    """Pure-JAX reference mirroring the kernel math exactly (bf16 x/W, f32 accum)."""
    h = x.astype(jnp.bfloat16)
    for l in range(NUM_MXU):
        b = bias_pack[l:l + 1, :MXU_WIDTHS[l]]
        y = jnp.dot(h, weights[l], preferred_element_type=jnp.float32)
        a = jnp.maximum(y + b, 0.0)
        h = a.astype(jnp.bfloat16) if l + 1 < NUM_MXU else a
    out = tail_pack[7:8, 0:1]
    for j in range(5):
        z = jnp.sum(h * tail_pack[j:j + 1, :20], axis=-1, keepdims=True)
        z = z + tail_pack[5:6, j:j + 1]
        out = out + jnp.maximum(z, 0.0) * tail_pack[6:7, j:j + 1]
    return out


def ann2_reference_f32(x, raw):
    """Full-precision reference of the original eval-mode PyTorch forward."""
    h = x.astype(jnp.float32)
    for l in range(6):
        w, b, gamma, beta, mean, var = raw[l]
        y = h @ w + b
        y = (y - mean) / jnp.sqrt(var + BN_EPS) * gamma + beta
        h = jnp.maximum(y, 0.0)
    w_last, b_last = raw[-1]
    return h @ w_last + b_last


if __name__ == "__main__":
    key = jax.random.PRNGKey(0)
    k_x, k_p, k_x2 = jax.random.split(key, 3)

    input_size = 64
    raw = init_raw_params(k_p, input_size)
    weights, bias_pack, tail_pack = fold_params(raw)

    # Small batch (single-tile path).
    batch = 8
    x = jax.random.normal(k_x, (batch, input_size), jnp.float32)
    out = jax.block_until_ready(ann2_forward(x, weights, bias_pack, tail_pack))
    assert out.shape == (batch, OUT)
    assert jnp.allclose(out, ann2_reference_folded(x, weights, bias_pack, tail_pack),
                        atol=2e-3, rtol=2e-3)
    assert jnp.allclose(out, ann2_reference_f32(x, raw), atol=1.5e-1, rtol=1.5e-1)

    # Moderate batch (exercises batch padding + multi-step "parallel" grid).
    batch2 = 300
    x2 = jax.random.normal(k_x2, (batch2, input_size), jnp.float32)
    out2 = jax.block_until_ready(ann2_forward(x2, weights, bias_pack, tail_pack))
    assert out2.shape == (batch2, OUT)
    assert jnp.allclose(out2, ann2_reference_folded(x2, weights, bias_pack, tail_pack),
                        atol=2e-3, rtol=2e-3)
    assert jnp.allclose(out2, ann2_reference_f32(x2, raw), atol=1.5e-1, rtol=1.5e-1)

    print("KERNEL_OK")
</pallas_src>

<mosaic_0001>
module attributes {stable_mosaic.version = 11 : i64} {
  func.func @ann2_kernel(%arg0: i32, %arg1: memref<8x64xbf16, #tpu.memory_space<vmem>>, %arg2: memref<64x320xbf16, #tpu.memory_space<vmem>>, %arg3: memref<320x160xbf16, #tpu.memory_space<vmem>>, %arg4: memref<160x160xbf16, #tpu.memory_space<vmem>>, %arg5: memref<160x80xbf16, #tpu.memory_space<vmem>>, %arg6: memref<80x20xbf16, #tpu.memory_space<vmem>>, %arg7: memref<8x384xf32, #tpu.memory_space<vmem>>, %arg8: memref<8x128xf32, #tpu.memory_space<vmem>>, %arg9: memref<8x1xf32, #tpu.memory_space<vmem>>) attributes {dimension_semantics = [#tpu.dimension_semantics<parallel>], iteration_bounds = array<i64: 1>, scalar_prefetch = 0 : i64, scratch_operands = 0 : i64, tpu.core_type = #tpu.core_type<tc>, window_params = [{transform_indices = @transform_0, window_bounds = array<i64: 8, 64>}, {pipeline_mode = #tpu.pipeline_mode<synchronous>, transform_indices = @transform_1, window_bounds = array<i64: 64, 320>}, {pipeline_mode = #tpu.pipeline_mode<synchronous>, transform_indices = @transform_2, window_bounds = array<i64: 320, 160>}, {pipeline_mode = #tpu.pipeline_mode<synchronous>, transform_indices = @transform_3, window_bounds = array<i64: 160, 160>}, {pipeline_mode = #tpu.pipeline_mode<synchronous>, transform_indices = @transform_4, window_bounds = array<i64: 160, 80>}, {pipeline_mode = #tpu.pipeline_mode<synchronous>, transform_indices = @transform_5, window_bounds = array<i64: 80, 20>}, {pipeline_mode = #tpu.pipeline_mode<synchronous>, transform_indices = @transform_6, window_bounds = array<i64: 8, 384>}, {pipeline_mode = #tpu.pipeline_mode<synchronous>, transform_indices = @transform_7, window_bounds = array<i64: 8, 128>}, {transform_indices = @transform_8, window_bounds = array<i64: 8, 1>}]} {
    %c0 = arith.constant 0 : index
    %c0_0 = arith.constant 0 : index
    %0 = vector.load %arg1[%c0, %c0_0] : memref<8x64xbf16, #tpu.memory_space<vmem>>, vector<8x64xbf16>
    %c0_1 = arith.constant 0 : index
    %c0_2 = arith.constant 0 : index
    %1 = vector.load %arg7[%c0_1, %c0_2] : memref<8x384xf32, #tpu.memory_space<vmem>>, vector<1x320xf32>
    %c0_3 = arith.constant 0 : index
    %c0_4 = arith.constant 0 : index
    %2 = vector.load %arg2[%c0_3, %c0_4] : memref<64x320xbf16, #tpu.memory_space<vmem>>, vector<64x320xbf16>
    %cst = arith.constant dense<0.000000e+00> : vector<8x320xf32>
    %3 = tpu.matmul %0, %2, %cst {dimension_numbers = #tpu.dot_dimension_numbers<[1], [0], [0], [1], [0, 0, 1, 1], [], []>} : vector<8x64xbf16>, vector<64x320xbf16>, vector<8x320xf32> -> vector<8x320xf32>
    %4 = vector.broadcast %1 : vector<1x320xf32> to vector<8x320xf32>
    %5 = arith.addf %3, %4 : vector<8x320xf32>
    %cst_5 = arith.constant 0.000000e+00 : f32
    %6 = vector.broadcast %cst_5 : f32 to vector<8x320xf32>
    %7 = arith.maximumf %5, %6 : vector<8x320xf32>
    %8 = arith.truncf %7 : vector<8x320xf32> to vector<8x320xbf16>
    %c1 = arith.constant 1 : index
    %c0_6 = arith.constant 0 : index
    %9 = vector.load %arg7[%c1, %c0_6] : memref<8x384xf32, #tpu.memory_space<vmem>>, vector<1x160xf32>
    %c0_7 = arith.constant 0 : index
    %c0_8 = arith.constant 0 : index
    %10 = vector.load %arg3[%c0_7, %c0_8] : memref<320x160xbf16, #tpu.memory_space<vmem>>, vector<320x160xbf16>
    %cst_9 = arith.constant dense<0.000000e+00> : vector<8x160xf32>
    %11 = tpu.matmul %8, %10, %cst_9 {dimension_numbers = #tpu.dot_dimension_numbers<[1], [0], [0], [1], [0, 0, 1, 1], [], []>} : vector<8x320xbf16>, vector<320x160xbf16>, vector<8x160xf32> -> vector<8x160xf32>
    %12 = vector.broadcast %9 : vector<1x160xf32> to vector<8x160xf32>
    %13 = arith.addf %11, %12 : vector<8x160xf32>
    %cst_10 = arith.constant 0.000000e+00 : f32
    %14 = vector.broadcast %cst_10 : f32 to vector<8x160xf32>
    %15 = arith.maximumf %13, %14 : vector<8x160xf32>
    %16 = arith.truncf %15 : vector<8x160xf32> to vector<8x160xbf16>
    %c2 = arith.constant 2 : index
    %c0_11 = arith.constant 0 : index
    %17 = vector.load %arg7[%c2, %c0_11] : memref<8x384xf32, #tpu.memory_space<vmem>>, vector<1x160xf32>
    %c0_12 = arith.constant 0 : index
    %c0_13 = arith.constant 0 : index
    %18 = vector.load %arg4[%c0_12, %c0_13] : memref<160x160xbf16, #tpu.memory_space<vmem>>, vector<160x160xbf16>
    %cst_14 = arith.constant dense<0.000000e+00> : vector<8x160xf32>
    %19 = tpu.matmul %16, %18, %cst_14 {dimension_numbers = #tpu.dot_dimension_numbers<[1], [0], [0], [1], [0, 0, 1, 1], [], []>} : vector<8x160xbf16>, vector<160x160xbf16>, vector<8x160xf32> -> vector<8x160xf32>
    %20 = vector.broadcast %17 : vector<1x160xf32> to vector<8x160xf32>
    %21 = arith.addf %19, %20 : vector<8x160xf32>
    %cst_15 = arith.constant 0.000000e+00 : f32
    %22 = vector.broadcast %cst_15 : f32 to vector<8x160xf32>
    %23 = arith.maximumf %21, %22 : vector<8x160xf32>
    %24 = arith.truncf %23 : vector<8x160xf32> to vector<8x160xbf16>
    %c3 = arith.constant 3 : index
    %c0_16 = arith.constant 0 : index
    %25 = vector.load %arg7[%c3, %c0_16] : memref<8x384xf32, #tpu.memory_space<vmem>>, vector<1x80xf32>
    %c0_17 = arith.constant 0 : index
    %c0_18 = arith.constant 0 : index
    %26 = vector.load %arg5[%c0_17, %c0_18] : memref<160x80xbf16, #tpu.memory_space<vmem>>, vector<160x80xbf16>
    %cst_19 = arith.constant dense<0.000000e+00> : vector<8x80xf32>
    %27 = tpu.matmul %24, %26, %cst_19 {dimension_numbers = #tpu.dot_dimension_numbers<[1], [0], [0], [1], [0, 0, 1, 1], [], []>} : vector<8x160xbf16>, vector<160x80xbf16>, vector<8x80xf32> -> vector<8x80xf32>
    %28 = vector.broadcast %25 : vector<1x80xf32> to vector<8x80xf32>
    %29 = arith.addf %27, %28 : vector<8x80xf32>
    %cst_20 = arith.constant 0.000000e+00 : f32
    %30 = vector.broadcast %cst_20 : f32 to vector<8x80xf32>
    %31 = arith.maximumf %29, %30 : vector<8x80xf32>
    %32 = arith.truncf %31 : vector<8x80xf32> to vector<8x80xbf16>
    %c4 = arith.constant 4 : index
    %c0_21 = arith.constant 0 : index
    %33 = vector.load %arg7[%c4, %c0_21] : memref<8x384xf32, #tpu.memory_space<vmem>>, vector<1x20xf32>
    %c0_22 = arith.constant 0 : index
    %c0_23 = arith.constant 0 : index
    %34 = vector.load %arg6[%c0_22, %c0_23] : memref<80x20xbf16, #tpu.memory_space<vmem>>, vector<80x20xbf16>
    %cst_24 = arith.constant dense<0.000000e+00> : vector<8x20xf32>
    %35 = tpu.matmul %32, %34, %cst_24 {dimension_numbers = #tpu.dot_dimension_numbers<[1], [0], [0], [1], [0, 0, 1, 1], [], []>} : vector<8x80xbf16>, vector<80x20xbf16>, vector<8x20xf32> -> vector<8x20xf32>
    %36 = vector.broadcast %33 : vector<1x20xf32> to vector<8x20xf32>
    %37 = arith.addf %35, %36 : vector<8x20xf32>
    %cst_25 = arith.constant 0.000000e+00 : f32
    %38 = vector.broadcast %cst_25 : f32 to vector<8x20xf32>
    %39 = arith.maximumf %37, %38 : vector<8x20xf32>
    %c0_26 = arith.constant 0 : index
    %c0_27 = arith.constant 0 : index
    %40 = vector.load %arg8[%c0_26, %c0_27] : memref<8x128xf32, #tpu.memory_space<vmem>>, vector<8x128xf32>
    %41 = vector.extract_strided_slice %40 {offsets = [7, 0], sizes = [1, 1], strides = [1, 1]} : vector<8x128xf32> to vector<1x1xf32>
    %42 = vector.extract_strided_slice %40 {offsets = [0, 0], sizes = [1, 20], strides = [1, 1]} : vector<8x128xf32> to vector<1x20xf32>
    %43 = vector.broadcast %42 : vector<1x20xf32> to vector<8x20xf32>
    %44 = arith.mulf %39, %43 : vector<8x20xf32>
    %cst_28 = arith.constant dense<0.000000e+00> : vector<8xf32>
    %45 = vector.multi_reduction <add>, %44, %cst_28 [1] : vector<8x20xf32> to vector<8xf32>
    %46 = vector.shape_cast %45 : vector<8xf32> to vector<8x1xf32>
    %47 = vector.extract_strided_slice %40 {offsets = [5, 0], sizes = [1, 1], strides = [1, 1]} : vector<8x128xf32> to vector<1x1xf32>
    %48 = vector.broadcast %47 : vector<1x1xf32> to vector<8x1xf32>
    %49 = arith.addf %46, %48 : vector<8x1xf32>
    %cst_29 = arith.constant 0.000000e+00 : f32
    %50 = vector.broadcast %cst_29 : f32 to vector<8x1xf32>
    %51 = arith.maximumf %49, %50 : vector<8x1xf32>
    %52 = vector.extract_strided_slice %40 {offsets = [6, 0], sizes = [1, 1], strides = [1, 1]} : vector<8x128xf32> to vector<1x1xf32>
    %53 = vector.broadcast %52 : vector<1x1xf32> to vector<8x1xf32>
    %54 = arith.mulf %51, %53 : vector<8x1xf32>
    %55 = vector.broadcast %41 : vector<1x1xf32> to vector<8x1xf32>
    %56 = arith.addf %55, %54 : vector<8x1xf32>
    %57 = vector.extract_strided_slice %40 {offsets = [1, 0], sizes = [1, 20], strides = [1, 1]} : vector<8x128xf32> to vector<1x20xf32>
    %58 = vector.broadcast %57 : vector<1x20xf32> to vector<8x20xf32>
    %59 = arith.mulf %39, %58 : vector<8x20xf32>
    %cst_30 = arith.constant dense<0.000000e+00> : vector<8xf32>
    %60 = vector.multi_reduction <add>, %59, %cst_30 [1] : vector<8x20xf32> to vector<8xf32>
    %61 = vector.shape_cast %60 : vector<8xf32> to vector<8x1xf32>
    %62 = vector.extract_strided_slice %40 {offsets = [5, 1], sizes = [1, 1], strides = [1, 1]} : vector<8x128xf32> to vector<1x1xf32>
    %63 = vector.broadcast %62 : vector<1x1xf32> to vector<8x1xf32>
    %64 = arith.addf %61, %63 : vector<8x1xf32>
    %cst_31 = arith.constant 0.000000e+00 : f32
    %65 = vector.broadcast %cst_31 : f32 to vector<8x1xf32>
    %66 = arith.maximumf %64, %65 : vector<8x1xf32>
    %67 = vector.extract_strided_slice %40 {offsets = [6, 1], sizes = [1, 1], strides = [1, 1]} : vector<8x128xf32> to vector<1x1xf32>
    %68 = vector.broadcast %67 : vector<1x1xf32> to vector<8x1xf32>
    %69 = arith.mulf %66, %68 : vector<8x1xf32>
    %70 = arith.addf %56, %69 : vector<8x1xf32>
    %71 = vector.extract_strided_slice %40 {offsets = [2, 0], sizes = [1, 20], strides = [1, 1]} : vector<8x128xf32> to vector<1x20xf32>
    %72 = vector.broadcast %71 : vector<1x20xf32> to vector<8x20xf32>
    %73 = arith.mulf %39, %72 : vector<8x20xf32>
    %cst_32 = arith.constant dense<0.000000e+00> : vector<8xf32>
    %74 = vector.multi_reduction <add>, %73, %cst_32 [1] : vector<8x20xf32> to vector<8xf32>
    %75 = vector.shape_cast %74 : vector<8xf32> to vector<8x1xf32>
    %76 = vector.extract_strided_slice %40 {offsets = [5, 2], sizes = [1, 1], strides = [1, 1]} : vector<8x128xf32> to vector<1x1xf32>
    %77 = vector.broadcast %76 : vector<1x1xf32> to vector<8x1xf32>
    %78 = arith.addf %75, %77 : vector<8x1xf32>
    %cst_33 = arith.constant 0.000000e+00 : f32
    %79 = vector.broadcast %cst_33 : f32 to vector<8x1xf32>
    %80 = arith.maximumf %78, %79 : vector<8x1xf32>
    %81 = vector.extract_strided_slice %40 {offsets = [6, 2], sizes = [1, 1], strides = [1, 1]} : vector<8x128xf32> to vector<1x1xf32>
    %82 = vector.broadcast %81 : vector<1x1xf32> to vector<8x1xf32>
    %83 = arith.mulf %80, %82 : vector<8x1xf32>
    %84 = arith.addf %70, %83 : vector<8x1xf32>
    %85 = vector.extract_strided_slice %40 {offsets = [3, 0], sizes = [1, 20], strides = [1, 1]} : vector<8x128xf32> to vector<1x20xf32>
    %86 = vector.broadcast %85 : vector<1x20xf32> to vector<8x20xf32>
    %87 = arith.mulf %39, %86 : vector<8x20xf32>
    %cst_34 = arith.constant dense<0.000000e+00> : vector<8xf32>
    %88 = vector.multi_reduction <add>, %87, %cst_34 [1] : vector<8x20xf32> to vector<8xf32>
    %89 = vector.shape_cast %88 : vector<8xf32> to vector<8x1xf32>
    %90 = vector.extract_strided_slice %40 {offsets = [5, 3], sizes = [1, 1], strides = [1, 1]} : vector<8x128xf32> to vector<1x1xf32>
    %91 = vector.broadcast %90 : vector<1x1xf32> to vector<8x1xf32>
    %92 = arith.addf %89, %91 : vector<8x1xf32>
    %cst_35 = arith.constant 0.000000e+00 : f32
    %93 = vector.broadcast %cst_35 : f32 to vector<8x1xf32>
    %94 = arith.maximumf %92, %93 : vector<8x1xf32>
    %95 = vector.extract_strided_slice %40 {offsets = [6, 3], sizes = [1, 1], strides = [1, 1]} : vector<8x128xf32> to vector<1x1xf32>
    %96 = vector.broadcast %95 : vector<1x1xf32> to vector<8x1xf32>
    %97 = arith.mulf %94, %96 : vector<8x1xf32>
    %98 = arith.addf %84, %97 : vector<8x1xf32>
    %99 = vector.extract_strided_slice %40 {offsets = [4, 0], sizes = [1, 20], strides = [1, 1]} : vector<8x128xf32> to vector<1x20xf32>
    %100 = vector.broadcast %99 : vector<1x20xf32> to vector<8x20xf32>
    %101 = arith.mulf %39, %100 : vector<8x20xf32>
    %cst_36 = arith.constant dense<0.000000e+00> : vector<8xf32>
    %102 = vector.multi_reduction <add>, %101, %cst_36 [1] : vector<8x20xf32> to vector<8xf32>
    %103 = vector.shape_cast %102 : vector<8xf32> to vector<8x1xf32>
    %104 = vector.extract_strided_slice %40 {offsets = [5, 4], sizes = [1, 1], strides = [1, 1]} : vector<8x128xf32> to vector<1x1xf32>
    %105 = vector.broadcast %104 : vector<1x1xf32> to vector<8x1xf32>
    %106 = arith.addf %103, %105 : vector<8x1xf32>
    %cst_37 = arith.constant 0.000000e+00 : f32
    %107 = vector.broadcast %cst_37 : f32 to vector<8x1xf32>
    %108 = arith.maximumf %106, %107 : vector<8x1xf32>
    %109 = vector.extract_strided_slice %40 {offsets = [6, 4], sizes = [1, 1], strides = [1, 1]} : vector<8x128xf32> to vector<1x1xf32>
    %110 = vector.broadcast %109 : vector<1x1xf32> to vector<8x1xf32>
    %111 = arith.mulf %108, %110 : vector<8x1xf32>
    %112 = arith.addf %98, %111 : vector<8x1xf32>
    %c0_38 = arith.constant 0 : index
    %c0_39 = arith.constant 0 : index
    %113 = vector.load %arg9[%c0_38, %c0_39] : memref<8x1xf32, #tpu.memory_space<vmem>>, vector<8x1xf32>
    tpu.vector_store %arg9[%c0_38, %c0_39], %112 {strides = array<i32>} : memref<8x1xf32, #tpu.memory_space<vmem>>, vector<8x1xf32>,
    return
  }
  func.func @transform_0(%arg0: i32) -> (i32, i32) {
    %c0_i32 = arith.constant 0 : i32
    %c0_i32_0 = arith.constant 0 : i32
    return %arg0, %c0_i32 : i32, i32
  }
  func.func @transform_1(%arg0: i32) -> (i32, i32) {
    %c0_i32 = arith.constant 0 : i32
    %c0_i32_0 = arith.constant 0 : i32
    %c0_i32_1 = arith.constant 0 : i32
    return %c0_i32, %c0_i32_0 : i32, i32
  }
  func.func @transform_2(%arg0: i32) -> (i32, i32) {
    %c0_i32 = arith.constant 0 : i32
    %c0_i32_0 = arith.constant 0 : i32
    %c0_i32_1 = arith.constant 0 : i32
    return %c0_i32, %c0_i32_0 : i32, i32
  }
  func.func @transform_3(%arg0: i32) -> (i32, i32) {
    %c0_i32 = arith.constant 0 : i32
    %c0_i32_0 = arith.constant 0 : i32
    %c0_i32_1 = arith.constant 0 : i32
    return %c0_i32, %c0_i32_0 : i32, i32
  }
  func.func @transform_4(%arg0: i32) -> (i32, i32) {
    %c0_i32 = arith.constant 0 : i32
    %c0_i32_0 = arith.constant 0 : i32
    %c0_i32_1 = arith.constant 0 : i32
    return %c0_i32, %c0_i32_0 : i32, i32
  }
  func.func @transform_5(%arg0: i32) -> (i32, i32) {
    %c0_i32 = arith.constant 0 : i32
    %c0_i32_0 = arith.constant 0 : i32
    %c0_i32_1 = arith.constant 0 : i32
    return %c0_i32, %c0_i32_0 : i32, i32
  }
  func.func @transform_6(%arg0: i32) -> (i32, i32) {
    %c0_i32 = arith.constant 0 : i32
    %c0_i32_0 = arith.constant 0 : i32
    %c0_i32_1 = arith.constant 0 : i32
    return %c0_i32, %c0_i32_0 : i32, i32
  }
  func.func @transform_7(%arg0: i32) -> (i32, i32) {
    %c0_i32 = arith.constant 0 : i32
    %c0_i32_0 = arith.constant 0 : i32
    %c0_i32_1 = arith.constant 0 : i32
    return %c0_i32, %c0_i32_0 : i32, i32
  }
  func.func @transform_8(%arg0: i32) -> (i32, i32) {
    %c0_i32 = arith.constant 0 : i32
    %c0_i32_0 = arith.constant 0 : i32
    return %arg0, %c0_i32 : i32, i32
  }
}

module attributes {stable_mosaic.version = 11 : i64} {
  func.func @ann2_kernel(%arg0: i32, %arg1: memref<8x64xbf16, #tpu.memory_space<vmem>>, %arg2: memref<64x320xbf16, #tpu.memory_space<vmem>>, %arg3: memref<320x160xbf16, #tpu.memory_space<vmem>>, %arg4: memref<160x160xbf16, #tpu.memory_space<vmem>>, %arg5: memref<160x80xbf16, #tpu.memory_space<vmem>>, %arg6: memref<80x20xbf16, #tpu.memory_space<vmem>>, %arg7: memref<8x384xf32, #tpu.memory_space<vmem>>, %arg8: memref<8x128xf32, #tpu.memory_space<vmem>>, %arg9: memref<8x1xf32, #tpu.memory_space<vmem>>) attributes {dimension_semantics = [#tpu.dimension_semantics<parallel>], iteration_bounds = array<i64: 1>, scalar_prefetch = 0 : i64, scratch_operands = 0 : i64, tpu.core_type = #tpu.core_type<tc>, window_params = [{transform_indices = @transform_0, window_bounds = array<i64: 8, 64>}, {pipeline_mode = #tpu.pipeline_mode<synchronous>, transform_indices = @transform_1, window_bounds = array<i64: 64, 320>}, {pipeline_mode = #tpu.pipeline_mode<synchronous>, transform_indices = @transform_2, window_bounds = array<i64: 320, 160>}, {pipeline_mode = #tpu.pipeline_mode<synchronous>, transform_indices = @transform_3, window_bounds = array<i64: 160, 160>}, {pipeline_mode = #tpu.pipeline_mode<synchronous>, transform_indices = @transform_4, window_bounds = array<i64: 160, 80>}, {pipeline_mode = #tpu.pipeline_mode<synchronous>, transform_indices = @transform_5, window_bounds = array<i64: 80, 20>}, {pipeline_mode = #tpu.pipeline_mode<synchronous>, transform_indices = @transform_6, window_bounds = array<i64: 8, 384>}, {pipeline_mode = #tpu.pipeline_mode<synchronous>, transform_indices = @transform_7, window_bounds = array<i64: 8, 128>}, {transform_indices = @transform_8, window_bounds = array<i64: 8, 1>}]} {
    %c0 = arith.constant 0 : index
    %c0_0 = arith.constant 0 : index
    %0 = vector.load %arg1[%c0, %c0_0] : memref<8x64xbf16, #tpu.memory_space<vmem>>, vector<8x64xbf16>
    %c0_1 = arith.constant 0 : index
    %c0_2 = arith.constant 0 : index
    %1 = vector.load %arg7[%c0_1, %c0_2] : memref<8x384xf32, #tpu.memory_space<vmem>>, vector<1x320xf32>
    %c0_3 = arith.constant 0 : index
    %c0_4 = arith.constant 0 : index
    %2 = vector.load %arg2[%c0_3, %c0_4] : memref<64x320xbf16, #tpu.memory_space<vmem>>, vector<64x320xbf16>
    %cst = arith.constant dense<0.000000e+00> : vector<8x320xf32>
    %3 = tpu.matmul %0, %2, %cst {dimension_numbers = #tpu.dot_dimension_numbers<[1], [0], [0], [1], [0, 0, 1, 1], [], []>} : vector<8x64xbf16>, vector<64x320xbf16>, vector<8x320xf32> -> vector<8x320xf32>
    %4 = vector.broadcast %1 : vector<1x320xf32> to vector<8x320xf32>
    %5 = arith.addf %3, %4 : vector<8x320xf32>
    %cst_5 = arith.constant 0.000000e+00 : f32
    %6 = vector.broadcast %cst_5 : f32 to vector<8x320xf32>
    %7 = arith.maximumf %5, %6 : vector<8x320xf32>
    %8 = arith.truncf %7 : vector<8x320xf32> to vector<8x320xbf16>
    %c1 = arith.constant 1 : index
    %c0_6 = arith.constant 0 : index
    %9 = vector.load %arg7[%c1, %c0_6] : memref<8x384xf32, #tpu.memory_space<vmem>>, vector<1x160xf32>
    %c0_7 = arith.constant 0 : index
    %c0_8 = arith.constant 0 : index
    %10 = vector.load %arg3[%c0_7, %c0_8] : memref<320x160xbf16, #tpu.memory_space<vmem>>, vector<320x160xbf16>
    %cst_9 = arith.constant dense<0.000000e+00> : vector<8x160xf32>
    %11 = tpu.matmul %8, %10, %cst_9 {dimension_numbers = #tpu.dot_dimension_numbers<[1], [0], [0], [1], [0, 0, 1, 1], [], []>} : vector<8x320xbf16>, vector<320x160xbf16>, vector<8x160xf32> -> vector<8x160xf32>
    %12 = vector.broadcast %9 : vector<1x160xf32> to vector<8x160xf32>
    %13 = arith.addf %11, %12 : vector<8x160xf32>
    %cst_10 = arith.constant 0.000000e+00 : f32
    %14 = vector.broadcast %cst_10 : f32 to vector<8x160xf32>
    %15 = arith.maximumf %13, %14 : vector<8x160xf32>
    %16 = arith.truncf %15 : vector<8x160xf32> to vector<8x160xbf16>
    %c2 = arith.constant 2 : index
    %c0_11 = arith.constant 0 : index
    %17 = vector.load %arg7[%c2, %c0_11] : memref<8x384xf32, #tpu.memory_space<vmem>>, vector<1x160xf32>
    %c0_12 = arith.constant 0 : index
    %c0_13 = arith.constant 0 : index
    %18 = vector.load %arg4[%c0_12, %c0_13] : memref<160x160xbf16, #tpu.memory_space<vmem>>, vector<160x160xbf16>
    %cst_14 = arith.constant dense<0.000000e+00> : vector<8x160xf32>
    %19 = tpu.matmul %16, %18, %cst_14 {dimension_numbers = #tpu.dot_dimension_numbers<[1], [0], [0], [1], [0, 0, 1, 1], [], []>} : vector<8x160xbf16>, vector<160x160xbf16>, vector<8x160xf32> -> vector<8x160xf32>
    %20 = vector.broadcast %17 : vector<1x160xf32> to vector<8x160xf32>
    %21 = arith.addf %19, %20 : vector<8x160xf32>
    %cst_15 = arith.constant 0.000000e+00 : f32
    %22 = vector.broadcast %cst_15 : f32 to vector<8x160xf32>
    %23 = arith.maximumf %21, %22 : vector<8x160xf32>
    %24 = arith.truncf %23 : vector<8x160xf32> to vector<8x160xbf16>
    %c3 = arith.constant 3 : index
    %c0_16 = arith.constant 0 : index
    %25 = vector.load %arg7[%c3, %c0_16] : memref<8x384xf32, #tpu.memory_space<vmem>>, vector<1x80xf32>
    %c0_17 = arith.constant 0 : index
    %c0_18 = arith.constant 0 : index
    %26 = vector.load %arg5[%c0_17, %c0_18] : memref<160x80xbf16, #tpu.memory_space<vmem>>, vector<160x80xbf16>
    %cst_19 = arith.constant dense<0.000000e+00> : vector<8x80xf32>
    %27 = tpu.matmul %24, %26, %cst_19 {dimension_numbers = #tpu.dot_dimension_numbers<[1], [0], [0], [1], [0, 0, 1, 1], [], []>} : vector<8x160xbf16>, vector<160x80xbf16>, vector<8x80xf32> -> vector<8x80xf32>
    %28 = vector.broadcast %25 : vector<1x80xf32> to vector<8x80xf32>
    %29 = arith.addf %27, %28 : vector<8x80xf32>
    %cst_20 = arith.constant 0.000000e+00 : f32
    %30 = vector.broadcast %cst_20 : f32 to vector<8x80xf32>
    %31 = arith.maximumf %29, %30 : vector<8x80xf32>
    %32 = arith.truncf %31 : vector<8x80xf32> to vector<8x80xbf16>
    %c4 = arith.constant 4 : index
    %c0_21 = arith.constant 0 : index
    %33 = vector.load %arg7[%c4, %c0_21] : memref<8x384xf32, #tpu.memory_space<vmem>>, vector<1x20xf32>
    %c0_22 = arith.constant 0 : index
    %c0_23 = arith.constant 0 : index
    %34 = vector.load %arg6[%c0_22, %c0_23] : memref<80x20xbf16, #tpu.memory_space<vmem>>, vector<80x20xbf16>
    %cst_24 = arith.constant dense<0.000000e+00> : vector<8x20xf32>
    %35 = tpu.matmul %32, %34, %cst_24 {dimension_numbers = #tpu.dot_dimension_numbers<[1], [0], [0], [1], [0, 0, 1, 1], [], []>} : vector<8x80xbf16>, vector<80x20xbf16>, vector<8x20xf32> -> vector<8x20xf32>
    %36 = vector.broadcast %33 : vector<1x20xf32> to vector<8x20xf32>
    %37 = arith.addf %35, %36 : vector<8x20xf32>
    %cst_25 = arith.constant 0.000000e+00 : f32
    %38 = vector.broadcast %cst_25 : f32 to vector<8x20xf32>
    %39 = arith.maximumf %37, %38 : vector<8x20xf32>
    %c0_26 = arith.constant 0 : index
    %c0_27 = arith.constant 0 : index
    %40 = vector.load %arg8[%c0_26, %c0_27] : memref<8x128xf32, #tpu.memory_space<vmem>>, vector<8x128xf32>
    %41 = vector.extract_strided_slice %40 {offsets = [7, 0], sizes = [1, 1], strides = [1, 1]} : vector<8x128xf32> to vector<1x1xf32>
    %42 = vector.extract_strided_slice %40 {offsets = [0, 0], sizes = [1, 20], strides = [1, 1]} : vector<8x128xf32> to vector<1x20xf32>
    %43 = vector.broadcast %42 : vector<1x20xf32> to vector<8x20xf32>
    %44 = arith.mulf %39, %43 : vector<8x20xf32>
    %cst_28 = arith.constant dense<0.000000e+00> : vector<8xf32>
    %45 = vector.multi_reduction <add>, %44, %cst_28 [1] : vector<8x20xf32> to vector<8xf32>
    %46 = vector.shape_cast %45 : vector<8xf32> to vector<8x1xf32>
    %47 = vector.extract_strided_slice %40 {offsets = [5, 0], sizes = [1, 1], strides = [1, 1]} : vector<8x128xf32> to vector<1x1xf32>
    %48 = vector.broadcast %47 : vector<1x1xf32> to vector<8x1xf32>
    %49 = arith.addf %46, %48 : vector<8x1xf32>
    %cst_29 = arith.constant 0.000000e+00 : f32
    %50 = vector.broadcast %cst_29 : f32 to vector<8x1xf32>
    %51 = arith.maximumf %49, %50 : vector<8x1xf32>
    %52 = vector.extract_strided_slice %40 {offsets = [6, 0], sizes = [1, 1], strides = [1, 1]} : vector<8x128xf32> to vector<1x1xf32>
    %53 = vector.broadcast %52 : vector<1x1xf32> to vector<8x1xf32>
    %54 = arith.mulf %51, %53 : vector<8x1xf32>
    %55 = vector.broadcast %41 : vector<1x1xf32> to vector<8x1xf32>
    %56 = arith.addf %55, %54 : vector<8x1xf32>
    %57 = vector.extract_strided_slice %40 {offsets = [1, 0], sizes = [1, 20], strides = [1, 1]} : vector<8x128xf32> to vector<1x20xf32>
    %58 = vector.broadcast %57 : vector<1x20xf32> to vector<8x20xf32>
    %59 = arith.mulf %39, %58 : vector<8x20xf32>
    %cst_30 = arith.constant dense<0.000000e+00> : vector<8xf32>
    %60 = vector.multi_reduction <add>, %59, %cst_30 [1] : vector<8x20xf32> to vector<8xf32>
    %61 = vector.shape_cast %60 : vector<8xf32> to vector<8x1xf32>
    %62 = vector.extract_strided_slice %40 {offsets = [5, 1], sizes = [1, 1], strides = [1, 1]} : vector<8x128xf32> to vector<1x1xf32>
    %63 = vector.broadcast %62 : vector<1x1xf32> to vector<8x1xf32>
    %64 = arith.addf %61, %63 : vector<8x1xf32>
    %cst_31 = arith.constant 0.000000e+00 : f32
    %65 = vector.broadcast %cst_31 : f32 to vector<8x1xf32>
    %66 = arith.maximumf %64, %65 : vector<8x1xf32>
    %67 = vector.extract_strided_slice %40 {offsets = [6, 1], sizes = [1, 1], strides = [1, 1]} : vector<8x128xf32> to vector<1x1xf32>
    %68 = vector.broadcast %67 : vector<1x1xf32> to vector<8x1xf32>
    %69 = arith.mulf %66, %68 : vector<8x1xf32>
    %70 = arith.addf %56, %69 : vector<8x1xf32>
    %71 = vector.extract_strided_slice %40 {offsets = [2, 0], sizes = [1, 20], strides = [1, 1]} : vector<8x128xf32> to vector<1x20xf32>
    %72 = vector.broadcast %71 : vector<1x20xf32> to vector<8x20xf32>
    %73 = arith.mulf %39, %72 : vector<8x20xf32>
    %cst_32 = arith.constant dense<0.000000e+00> : vector<8xf32>
    %74 = vector.multi_reduction <add>, %73, %cst_32 [1] : vector<8x20xf32> to vector<8xf32>
    %75 = vector.shape_cast %74 : vector<8xf32> to vector<8x1xf32>
    %76 = vector.extract_strided_slice %40 {offsets = [5, 2], sizes = [1, 1], strides = [1, 1]} : vector<8x128xf32> to vector<1x1xf32>
    %77 = vector.broadcast %76 : vector<1x1xf32> to vector<8x1xf32>
    %78 = arith.addf %75, %77 : vector<8x1xf32>
    %cst_33 = arith.constant 0.000000e+00 : f32
    %79 = vector.broadcast %cst_33 : f32 to vector<8x1xf32>
    %80 = arith.maximumf %78, %79 : vector<8x1xf32>
    %81 = vector.extract_strided_slice %40 {offsets = [6, 2], sizes = [1, 1], strides = [1, 1]} : vector<8x128xf32> to vector<1x1xf32>
    %82 = vector.broadcast %81 : vector<1x1xf32> to vector<8x1xf32>
    %83 = arith.mulf %80, %82 : vector<8x1xf32>
    %84 = arith.addf %70, %83 : vector<8x1xf32>
    %85 = vector.extract_strided_slice %40 {offsets = [3, 0], sizes = [1, 20], strides = [1, 1]} : vector<8x128xf32> to vector<1x20xf32>
    %86 = vector.broadcast %85 : vector<1x20xf32> to vector<8x20xf32>
    %87 = arith.mulf %39, %86 : vector<8x20xf32>
    %cst_34 = arith.constant dense<0.000000e+00> : vector<8xf32>
    %88 = vector.multi_reduction <add>, %87, %cst_34 [1] : vector<8x20xf32> to vector<8xf32>
    %89 = vector.shape_cast %88 : vector<8xf32> to vector<8x1xf32>
    %90 = vector.extract_strided_slice %40 {offsets = [5, 3], sizes = [1, 1], strides = [1, 1]} : vector<8x128xf32> to vector<1x1xf32>
    %91 = vector.broadcast %90 : vector<1x1xf32> to vector<8x1xf32>
    %92 = arith.addf %89, %91 : vector<8x1xf32>
    %cst_35 = arith.constant 0.000000e+00 : f32
    %93 = vector.broadcast %cst_35 : f32 to vector<8x1xf32>
    %94 = arith.maximumf %92, %93 : vector<8x1xf32>
    %95 = vector.extract_strided_slice %40 {offsets = [6, 3], sizes = [1, 1], strides = [1, 1]} : vector<8x128xf32> to vector<1x1xf32>
    %96 = vector.broadcast %95 : vector<1x1xf32> to vector<8x1xf32>
    %97 = arith.mulf %94, %96 : vector<8x1xf32>
    %98 = arith.addf %84, %97 : vector<8x1xf32>
    %99 = vector.extract_strided_slice %40 {offsets = [4, 0], sizes = [1, 20], strides = [1, 1]} : vector<8x128xf32> to vector<1x20xf32>
    %100 = vector.broadcast %99 : vector<1x20xf32> to vector<8x20xf32>
    %101 = arith.mulf %39, %100 : vector<8x20xf32>
    %cst_36 = arith.constant dense<0.000000e+00> : vector<8xf32>
    %102 = vector.multi_reduction <add>, %101, %cst_36 [1] : vector<8x20xf32> to vector<8xf32>
    %103 = vector.shape_cast %102 : vector<8xf32> to vector<8x1xf32>
    %104 = vector.extract_strided_slice %40 {offsets = [5, 4], sizes = [1, 1], strides = [1, 1]} : vector<8x128xf32> to vector<1x1xf32>
    %105 = vector.broadcast %104 : vector<1x1xf32> to vector<8x1xf32>
    %106 = arith.addf %103, %105 : vector<8x1xf32>
    %cst_37 = arith.constant 0.000000e+00 : f32
    %107 = vector.broadcast %cst_37 : f32 to vector<8x1xf32>
    %108 = arith.maximumf %106, %107 : vector<8x1xf32>
    %109 = vector.extract_strided_slice %40 {offsets = [6, 4], sizes = [1, 1], strides = [1, 1]} : vector<8x128xf32> to vector<1x1xf32>
    %110 = vector.broadcast %109 : vector<1x1xf32> to vector<8x1xf32>
    %111 = arith.mulf %108, %110 : vector<8x1xf32>
    %112 = arith.addf %98, %111 : vector<8x1xf32>
    %c0_38 = arith.constant 0 : index
    %c0_39 = arith.constant 0 : index
    %113 = vector.load %arg9[%c0_38, %c0_39] : memref<8x1xf32, #tpu.memory_space<vmem>>, vector<8x1xf32>
    tpu.vector_store %arg9[%c0_38, %c0_39], %112 {strides = array<i32>} : memref<8x1xf32, #tpu.memory_space<vmem>>, vector<8x1xf32>,
    return
  }
  func.func @transform_0(%arg0: i32) -> (i32, i32) {
    %c0_i32 = arith.constant 0 : i32
    %c0_i32_0 = arith.constant 0 : i32
    return %arg0, %c0_i32 : i32, i32
  }
  func.func @transform_1(%arg0: i32) -> (i32, i32) {
    %c0_i32 = arith.constant 0 : i32
    %c0_i32_0 = arith.constant 0 : i32
    %c0_i32_1 = arith.constant 0 : i32
    return %c0_i32, %c0_i32_0 : i32, i32
  }
  func.func @transform_2(%arg0: i32) -> (i32, i32) {
    %c0_i32 = arith.constant 0 : i32
    %c0_i32_0 = arith.constant 0 : i32
    %c0_i32_1 = arith.constant 0 : i32
    return %c0_i32, %c0_i32_0 : i32, i32
  }
  func.func @transform_3(%arg0: i32) -> (i32, i32) {
    %c0_i32 = arith.constant 0 : i32
    %c0_i32_0 = arith.constant 0 : i32
    %c0_i32_1 = arith.constant 0 : i32
    return %c0_i32, %c0_i32_0 : i32, i32
  }
  func.func @transform_4(%arg0: i32) -> (i32, i32) {
    %c0_i32 = arith.constant 0 : i32
    %c0_i32_0 = arith.constant 0 : i32
    %c0_i32_1 = arith.constant 0 : i32
    return %c0_i32, %c0_i32_0 : i32, i32
  }
  func.func @transform_5(%arg0: i32) -> (i32, i32) {
    %c0_i32 = arith.constant 0 : i32
    %c0_i32_0 = arith.constant 0 : i32
    %c0_i32_1 = arith.constant 0 : i32
    return %c0_i32, %c0_i32_0 : i32, i32
  }
  func.func @transform_6(%arg0: i32) -> (i32, i32) {
    %c0_i32 = arith.constant 0 : i32
    %c0_i32_0 = arith.constant 0 : i32
    %c0_i32_1 = arith.constant 0 : i32
    return %c0_i32, %c0_i32_0 : i32, i32
  }
  func.func @transform_7(%arg0: i32) -> (i32, i32) {
    %c0_i32 = arith.constant 0 : i32
    %c0_i32_0 = arith.constant 0 : i32
    %c0_i32_1 = arith.constant 0 : i32
    return %c0_i32, %c0_i32_0 : i32, i32
  }
  func.func @transform_8(%arg0: i32) -> (i32, i32) {
    %c0_i32 = arith.constant 0 : i32
    %c0_i32_0 = arith.constant 0 : i32
    return %arg0, %c0_i32 : i32, i32
  }
}

</mosaic_0001>

<bundles_post_ra>
// kernel: _ann2_forward.1
= control target key start
LH: loop header
LB: loop body
LE: loop exit
PB: predicated region body
PF: predicated region fallthrough
CT: control target
= control target key end

     0   :  { %vm119_vm0 = vcmask 523264   ;;  %vm627_vm1 = vcmask 261120   ;;  %vm840_vm2 = vcmask 654336   ;;  %vm861_vm3 = vcmask 162816   ;;  %s1382_s19 = smov 126   ;;  %s1383_s20 = smov 124   ;;  %s1943_s1 = inlined_call_operand.vmem [shape: bf16[64,320], index: 1, kind: input, shape index: {}]   ;;  %s1944_s2 = inlined_call_operand.vmem [shape: bf16[320,160], index: 2, kind: input, shape index: {}]   ;;  %s1945_s0 = inlined_call_operand.vmem [shape: bf16[8,64], index: 0, kind: input, shape index: {}]   ;;  %s1946_s6 = inlined_call_operand.vmem [shape: f32[8,384], index: 6, kind: input, shape index: {}]   ;;  %s1947_s3 = inlined_call_operand.vmem [shape: bf16[160,160], index: 3, kind: input, shape index: {}]   ;;  %s1948_s4 = inlined_call_operand.vmem [shape: bf16[160,80], index: 4, kind: input, shape index: {}]   ;;  %s1949_s5 = inlined_call_operand.vmem [shape: bf16[80,20], index: 5, kind: input, shape index: {}]   ;;  %s1950_s7 = inlined_call_operand.vmem [shape: f32[8,128], index: 7, kind: input, shape index: {}]   ;;  %s1951_s8 = inlined_call_operand.vmem [shape: f32[8,1], index: 8, kind: output, shape index: {}]  }
   0x1   :  { %v968_v0 = vld [vmem:[%s1943_s1 + $0x48] sm:$0xf]  ;;  %v1299_v1 = vld [vmem:[%s1943_s1 + $0x50] sm:$0xf0]  ;;  %v976_v2 = vld [vmem:[%s1943_s1 + $0x50] sm:$0xf] }
   0x2   :  { %v969_v3 = vor.u32 %v1299_v1, %v968_v0  ;;  %v1300_v4 = vld [vmem:[%s1943_s1 + $0x58] sm:$0xf0]  ;;  %v1298_v5 = vld [vmem:[%s1943_s1 + $0x4c] sm:$0xf]  ;;  %v970_v6 = vld [vmem:[%s1943_s1 + $0x54] sm:$0xf0] }
   0x3   :  { %v977_v7 = vor.u32 %v1300_v4, %v976_v2  ;;  %v973_v8 = vor.u32 %v1298_v5, %v970_v6  ;;  %v956_v9 = vld [vmem:[%s1943_s1 + $0x30] sm:$0xf]  ;;  %v1296_v10 = vld [vmem:[%s1943_s1 + $0x38] sm:$0xf0]  ;;  %v964_v11 = vld [vmem:[%s1943_s1 + $0x38] sm:$0xf] }
   0x4   :  { %127 = vmatpush.bf16.msra.mxu0 %v969_v3  ;;  %v957_v12 = vor.u32 %v1296_v10, %v956_v9  ;;  %v1297_v13 = vld [vmem:[%s1943_s1 + $0x40] sm:$0xf0]  ;;  %v1295_v14 = vld [vmem:[%s1943_s1 + $0x34] sm:$0xf]  ;;  %v958_v15 = vld [vmem:[%s1943_s1 + $0x3c] sm:$0xf0] }
   0x5   :  { %153 = vmatpush.bf16.msra.mxu2 %v977_v7  ;;  %140 = vmatpush.bf16.msra.mxu3 %v973_v8  ;;  %v965_v16 = vor.u32 %v1297_v13, %v964_v11  ;;  %v961_v17 = vor.u32 %v1295_v14, %v958_v15  ;;  %v944_v18 = vld [vmem:[%s1943_s1 + $0x18] sm:$0xf]  ;;  %v1293_v19 = vld [vmem:[%s1943_s1 + $0x20] sm:$0xf0]  ;;  %v952_v20 = vld [vmem:[%s1943_s1 + $0x20] sm:$0xf] }
   0x6   :  { %v1294_v21 = vld [vmem:[%s1943_s1 + $0x28] sm:$0xf0]  ;;  %v1292_v22 = vld [vmem:[%s1943_s1 + $0x1c] sm:$0xf]  ;;  %v946_v23 = vld [vmem:[%s1943_s1 + $0x24] sm:$0xf0]  ;;  %v945_v24 = vor.u32 %v1293_v19, %v944_v18 }
   0x7   :  { %v932_v25 = vld [vmem:[%s1943_s1] sm:$0xf]  ;;  %v953_v26 = vor.u32 %v1294_v21, %v952_v20  ;;  %v949_v27 = vor.u32 %v1292_v22, %v946_v23  ;;  %v1290_v28 = vld [vmem:[%s1943_s1 + $0x8] sm:$0xf0]  ;;  %v940_v29 = vld [vmem:[%s1943_s1 + $0x8] sm:$0xf] }
   0x8   :  { %128 = vmatpush.bf16.msra.mxu0 %v957_v12  ;;  %v1291_v30 = vld [vmem:[%s1943_s1 + $0x10] sm:$0xf0]  ;;  %v1289_v31 = vld [vmem:[%s1943_s1 + $0x4] sm:$0xf]  ;;  %v934_v32 = vld [vmem:[%s1943_s1 + $0xc] sm:$0xf0]  ;;  %v933_v37 = vor.u32 %v1290_v28, %v932_v25 }
   0x9   :  { %154 = vmatpush.bf16.msra.mxu2 %v965_v16  ;;  %141 = vmatpush.bf16.msra.mxu3 %v961_v17  ;;  %v1040_v33 = vld [vmem:[%s1944_s2 + $0x70] sm:$0xf]  ;;  %v1316_v34 = vld [vmem:[%s1944_s2 + $0x74] sm:$0xf0]  ;;  %v1315_v35 = vld [vmem:[%s1944_s2 + $0x74] sm:$0xf]  ;;  %v941_v38 = vor.u32 %v1291_v30, %v940_v29  ;;  %v937_v39 = vor.u32 %v1289_v31, %v934_v32 }
   0xa   :  { %v1042_v36 = vld [vmem:[%s1944_s2 + $0x78] sm:$0xf0]  ;;  %v1032_v40 = vld [vmem:[%s1944_s2 + $0x60] sm:$0xf]  ;;  %v1104_v41 = vld [vmem:[%s1944_s2 + $0xf0] sm:$0xf]  ;;  %v1041_v42 = vor.u32 %v1316_v34, %v1040_v33 }
   0xb   :  { %v1045_v43 = vor.u32 %v1315_v35, %v1042_v36  ;;  %v1332_v44 = vld [vmem:[%s1944_s2 + $0xf4] sm:$0xf0]  ;;  %v1136_v45 = vld [vmem:[%s1944_s2 + $0x130] sm:$0xf]  ;;  %v1314_v47 = vld [vmem:[%s1944_s2 + $0x64] sm:$0xf0] }
   0xc   :  { %129 = vmatpush.bf16.msra.mxu0 %v945_v24  ;;  %v1340_v46 = vld [vmem:[%s1944_s2 + $0x134] sm:$0xf0]  ;;  %v1313_v48 = vld [vmem:[%s1944_s2 + $0x64] sm:$0xf]  ;;  %v1034_v49 = vld [vmem:[%s1944_s2 + $0x68] sm:$0xf0]  ;;  %v1105_v53 = vor.u32 %v1332_v44, %v1104_v41  ;;  %v1033_v55 = vor.u32 %v1314_v47, %v1032_v40 }
   0xd   :  { %155 = vmatpush.bf16.msra.mxu2 %v953_v26  ;;  %142 = vmatpush.bf16.msra.mxu3 %v949_v27  ;;  %v1137_v50 = vor.u32 %v1340_v46, %v1136_v45  ;;  %v30_v51 = vld [vmem:[%s1945_s0] sm:$0xf]  ;;  %v1338_v54 = vld [vmem:[%s1944_s2 + $0x124] sm:$0xf0]  ;;  %v1037_v56 = vor.u32 %v1313_v48, %v1034_v49  ;;  %v1024_v57 = vld [vmem:[%s1944_s2 + $0x50] sm:$0xf] }
   0xe   :  { %v1128_v52 = vld [vmem:[%s1944_s2 + $0x120] sm:$0xf]  ;;  %v1330_v59 = vld [vmem:[%s1944_s2 + $0xe4] sm:$0xf0]  ;;  %v1312_v60 = vld [vmem:[%s1944_s2 + $0x54] sm:$0xf0] }
   0xf   :  { %v1096_v58 = vld [vmem:[%s1944_s2 + $0xe0] sm:$0xf]  ;;  %v1311_v61 = vld [vmem:[%s1944_s2 + $0x54] sm:$0xf]  ;;  %v1026_v62 = vld [vmem:[%s1944_s2 + $0x58] sm:$0xf0]  ;;  %448 = vmatpush.bf16.msra.mxu1 %v1137_v50  ;;  %v1129_v63 = vor.u32 %v1338_v54, %v1128_v52  ;;  %v1025_v3 = vor.u32 %v1312_v60, %v1024_v57 }
  0x10   :  { %130 = vmatpush.bf16.msra.mxu0 %v933_v37  ;;  %v1120_v0 = vld [vmem:[%s1944_s2 + $0x110] sm:$0xf]  ;;  %v1336_v1 = vld [vmem:[%s1944_s2 + $0x114] sm:$0xf0]  ;;  %v1097_v2 = vor.u32 %v1330_v59, %v1096_v58  ;;  %v1029_v4 = vor.u32 %v1311_v61, %v1026_v62  ;;  %v1016_v5 = vld [vmem:[%s1944_s2 + $0x40] sm:$0xf] }
  0x11   :  { %156 = vmatpush.bf16.msra.mxu2 %v941_v38  ;;  %143 = vmatpush.bf16.msra.mxu3 %v937_v39  ;;  %v1088_v6 = vld [vmem:[%s1944_s2 + $0xd0] sm:$0xf]  ;;  %v1328_v7 = vld [vmem:[%s1944_s2 + $0xd4] sm:$0xf0]  ;;  %v1310_v8 = vld [vmem:[%s1944_s2 + $0x44] sm:$0xf0]  ;;  %v1121_v11 = vor.u32 %v1336_v1, %v1120_v0 }
  0x12   :  { %v1309_v9 = vld [vmem:[%s1944_s2 + $0x44] sm:$0xf]  ;;  %v1018_v10 = vld [vmem:[%s1944_s2 + $0x48] sm:$0xf0]  ;;  %v1112_v12 = vld [vmem:[%s1944_s2 + $0x100] sm:$0xf]  ;;  %v1089_v14 = vor.u32 %v1328_v7, %v1088_v6  ;;  %v1017_v17 = vor.u32 %v1310_v8, %v1016_v5 }
  0x13   :  { %978 = vmatmul.msk.bf16.vlgmr.msra.gmra.mxu0 %vm119_vm0, %v30_v51  ;;  %449 = vmatpush.bf16.msra.mxu1 %v1129_v63  ;;  %v1334_v13 = vld [vmem:[%s1944_s2 + $0x104] sm:$0xf0]  ;;  %v1331_v15 = vld [vmem:[%s1944_s2 + $0xf4] sm:$0xf]  ;;  %v1106_v16 = vld [vmem:[%s1944_s2 + $0xf8] sm:$0xf0]  ;;  %v1021_v18 = vor.u32 %v1309_v9, %v1018_v10 }
  0x14   :  { %980 = vmatmul.msk.bf16.vlgmr.msra.gmra.mxu2 %vm119_vm0, %v30_v51  ;;  %979 = vmatmul.msk.bf16.vlgmr.msra.gmra.mxu3 %vm119_vm0, %v30_v51  ;;  %v1008_v19 = vld [vmem:[%s1944_s2 + $0x30] sm:$0xf]  ;;  %v1080_v20 = vld [vmem:[%s1944_s2 + $0xc0] sm:$0xf]  ;;  %v1326_v21 = vld [vmem:[%s1944_s2 + $0xc4] sm:$0xf0]  ;;  %v1113_v25 = vor.u32 %v1334_v13, %v1112_v12  ;;  %v1109_v26 = vor.u32 %v1331_v15, %v1106_v16 }
  0x15   :  { %418 = vmatpush.bf16.msrb.mxu3 %v1041_v42  ;;  %457 = vmatpush.bf16.msrb.mxu2 %v1045_v43  ;;  %v1308_v22 = vld [vmem:[%s1944_s2 + $0x34] sm:$0xf0]  ;;  %v1307_v23 = vld [vmem:[%s1944_s2 + $0x34] sm:$0xf]  ;;  %v1010_v24 = vld [vmem:[%s1944_s2 + $0x38] sm:$0xf0]  ;;  %v1081_v27 = vor.u32 %v1326_v21, %v1080_v20 }
  0x16   :  { %431 = vmatpush.bf16.msrb.mxu0 %v1105_v53  ;;  %v1009_v28 = vor.u32 %v1308_v22, %v1008_v19  ;;  %v1013_v29 = vor.u32 %v1307_v23, %v1010_v24  ;;  %v1000_v30 = vld [vmem:[%s1944_s2 + $0x20] sm:$0xf]  ;;  %v1306_v31 = vld [vmem:[%s1944_s2 + $0x24] sm:$0xf0]  ;;  %v1305_v32 = vld [vmem:[%s1944_s2 + $0x24] sm:$0xf] }
  0x17   :  { %450 = vmatpush.bf16.msra.mxu1 %v1121_v11  ;;  %v1002_v33 = vld [vmem:[%s1944_s2 + $0x28] sm:$0xf0]  ;;  %v1001_v34 = vor.u32 %v1306_v31, %v1000_v30  ;;  %v992_v36 = vld [vmem:[%s1944_s2 + $0x10] sm:$0xf]  ;;  %v1304_v37 = vld [vmem:[%s1944_s2 + $0x14] sm:$0xf0] }
  0x18   :  { %v1005_v35 = vor.u32 %v1305_v32, %v1002_v33  ;;  %v1072_v38 = vld [vmem:[%s1944_s2 + $0xb0] sm:$0xf]  ;;  %v993_v39 = vor.u32 %v1304_v37, %v992_v36  ;;  %v1324_v40 = vld [vmem:[%s1944_s2 + $0xb4] sm:$0xf0]  ;;  %v1303_v41 = vld [vmem:[%s1944_s2 + $0x14] sm:$0xf] }
  0x19   :  { %419 = vmatpush.bf16.msrb.mxu3 %v1033_v55  ;;  %458 = vmatpush.bf16.msrb.mxu2 %v1037_v56  ;;  %v994_v42 = vld [vmem:[%s1944_s2 + $0x18] sm:$0xf0]  ;;  %v1073_v43 = vor.u32 %v1324_v40, %v1072_v38  ;;  %v1329_v45 = vld [vmem:[%s1944_s2 + $0xe4] sm:$0xf]  ;;  %v1098_v46 = vld [vmem:[%s1944_s2 + $0xe8] sm:$0xf0] }
  0x1a   :  { %432 = vmatpush.bf16.msrb.mxu0 %v1097_v2  ;;  %v997_v44 = vor.u32 %v1303_v41, %v994_v42  ;;  %v1101_v47 = vor.u32 %v1329_v45, %v1098_v46  ;;  %v984_v48 = vld [vmem:[%s1944_s2] sm:$0xf]  ;;  %v1302_v49 = vld [vmem:[%s1944_s2 + $0x4] sm:$0xf0]  ;;  %v1301_v53 = vld [vmem:[%s1944_s2 + $0x4] sm:$0xf] }
  0x1b   :  { %451 = vmatpush.bf16.msra.mxu1 %v1113_v25  ;;  %v1064_v50 = vld [vmem:[%s1944_s2 + $0xa0] sm:$0xf]  ;;  %v985_v51 = vor.u32 %v1302_v49, %v984_v48  ;;  %v1322_v52 = vld [vmem:[%s1944_s2 + $0xa4] sm:$0xf0]  ;;  %v986_v54 = vld [vmem:[%s1944_s2 + $0x8] sm:$0xf0] }
  0x1c   :  { %v1065_v55 = vor.u32 %v1322_v52, %v1064_v50  ;;  %v989_v56 = vor.u32 %v1301_v53, %v986_v54  ;;  %v1327_v57 = vld [vmem:[%s1944_s2 + $0xd4] sm:$0xf]  ;;  %v1090_v58 = vld [vmem:[%s1944_s2 + $0xd8] sm:$0xf0]  ;;  %v1056_v60 = vld [vmem:[%s1944_s2 + $0x90] sm:$0xf] }
  0x1d   :  { %420 = vmatpush.bf16.msrb.mxu3 %v1025_v3  ;;  %459 = vmatpush.bf16.msrb.mxu2 %v1029_v4  ;;  %v1093_v59 = vor.u32 %v1327_v57, %v1090_v58  ;;  %v1320_v61 = vld [vmem:[%s1944_s2 + $0x94] sm:$0xf0]  ;;  %v1339_v62 = vld [vmem:[%s1944_s2 + $0x134] sm:$0xf]  ;;  %v1138_v0 = vld [vmem:[%s1944_s2 + $0x138] sm:$0xf0] }
  0x1e   :  { %433 = vmatpush.bf16.msrb.mxu0 %v1089_v14  ;;  %v1057_v63 = vor.u32 %v1320_v61, %v1056_v60  ;;  %v1141_v1 = vor.u32 %v1339_v62, %v1138_v0  ;;  %v1325_v2 = vld [vmem:[%s1944_s2 + $0xc4] sm:$0xf]  ;;  %v1082_v3 = vld [vmem:[%s1944_s2 + $0xc8] sm:$0xf0]  ;;  %v1048_v5 = vld [vmem:[%s1944_s2 + $0x80] sm:$0xf] }
  0x1f   :  { %470 = vmatpush.bf16.msrb.mxu1 %v1109_v26  ;;  %v1085_v4 = vor.u32 %v1325_v2, %v1082_v3  ;;  %v1318_v6 = vld [vmem:[%s1944_s2 + $0x84] sm:$0xf0]  ;;  %v1337_v7 = vld [vmem:[%s1944_s2 + $0x124] sm:$0xf]  ;;  %v1130_v9 = vld [vmem:[%s1944_s2 + $0x128] sm:$0xf0] }
  0x20   :  { %v1049_v8 = vor.u32 %v1318_v6, %v1048_v5  ;;  %v1133_v10 = vor.u32 %v1337_v7, %v1130_v9  ;;  %v1323_v11 = vld [vmem:[%s1944_s2 + $0xb4] sm:$0xf]  ;;  %v1074_v12 = vld [vmem:[%s1944_s2 + $0xb8] sm:$0xf0]  ;;  %v1333_v19 = vld [vmem:[%s1944_s2 + $0x104] sm:$0xf] }
  0x21   :  { %421 = vmatpush.bf16.msrb.mxu3 %v1017_v17  ;;  %460 = vmatpush.bf16.msrb.mxu2 %v1021_v18  ;;  %v1077_v13 = vor.u32 %v1323_v11, %v1074_v12  ;;  %v1335_v14 = vld [vmem:[%s1944_s2 + $0x114] sm:$0xf]  ;;  %v1122_v15 = vld [vmem:[%s1944_s2 + $0x118] sm:$0xf0]  ;;  %v1321_v17 = vld [vmem:[%s1944_s2 + $0xa4] sm:$0xf] }
  0x22   :  { %434 = vmatpush.bf16.msrb.mxu0 %v1081_v27  ;;  %v1125_v16 = vor.u32 %v1335_v14, %v1122_v15  ;;  %v1066_v18 = vld [vmem:[%s1944_s2 + $0xa8] sm:$0xf0]  ;;  %v1319_v22 = vld [vmem:[%s1944_s2 + $0x94] sm:$0xf]  ;;  %v1058_v23 = vld [vmem:[%s1944_s2 + $0x98] sm:$0xf0] }
  0x23   :  { %471 = vmatpush.bf16.msrb.mxu1 %v1101_v47  ;;  %v1069_v20 = vor.u32 %v1321_v17, %v1066_v18  ;;  %v1114_v21 = vld [vmem:[%s1944_s2 + $0x108] sm:$0xf0]  ;;  %v1061_v25 = vor.u32 %v1319_v22, %v1058_v23  ;;  %v1317_v26 = vld [vmem:[%s1944_s2 + $0x84] sm:$0xf]  ;;  %v1203_v31 = vld [vmem:[%s1947_s3 + $0x70] sm:$0xf] }
  0x24   :  { %v1117_v24 = vor.u32 %v1333_v19, %v1114_v21  ;;  %v1050_v27 = vld [vmem:[%s1944_s2 + $0x88] sm:$0xf0]  ;;  %v1356_v32 = vld [vmem:[%s1947_s3 + $0x74] sm:$0xf0]  ;;  %v1355_v38 = vld [vmem:[%s1947_s3 + $0x74] sm:$0xf] }
  0x25   :  { %422 = vmatpush.bf16.msrb.mxu3 %v1009_v28  ;;  %461 = vmatpush.bf16.msrb.mxu2 %v1013_v29  ;;  %v1053_v28 = vor.u32 %v1317_v26, %v1050_v27  ;;  %v31_v29 = vld [vmem:[%s1946_s6] ss:$8 sm:$0x7]  ;;  %v1204_v33 = vor.u32 %v1356_v32, %v1203_v31  ;;  %v1352_v42 = vld [vmem:[%s1947_s3 + $0x54] sm:$0xf0]  ;;  %vm924_vm4 = vcmask 7168  }
  0x26   :  { %435 = vmatpush.bf16.msrb.mxu0 %v1073_v43  ;;  %v49_v30 = vperm.slane %v31_v29, 0  ;;  %v1187_v41 = vld [vmem:[%s1947_s3 + $0x50] sm:$0xf]  ;;  %v50_v45 = vperm.slane %v31_v29, 1  ;;  %v1353_v48 = vld [vmem:[%s1947_s3 + $0x64] sm:$0xf] }
  0x27   :  { %472 = vmatpush.bf16.msrb.mxu1 %v1093_v59  ;;  %v1197_v49 = vld [vmem:[%s1947_s3 + $0x68] sm:$0xf0]  ;;  %v1188_v50 = vor.u32 %v1352_v42, %v1187_v41  ;;  %v1350_v52 = vld [vmem:[%s1947_s3 + $0x44] sm:$0xf0]  ;;  %v1351_v59 = vld [vmem:[%s1947_s3 + $0x54] sm:$0xf] }
  0x28   :  { %v1200_v58 = vor.u32 %v1353_v48, %v1197_v49  ;;  %v1189_v60 = vld [vmem:[%s1947_s3 + $0x58] sm:$0xf0]  ;;  %v1171_v0 = vld [vmem:[%s1947_s3 + $0x30] sm:$0xf]  ;;  %v1349_v5 = vld [vmem:[%s1947_s3 + $0x44] sm:$0xf] }
  0x29   :  { %423 = vmatpush.bf16.msrb.mxu3 %v1001_v34  ;;  %462 = vmatpush.bf16.msrb.mxu2 %v1005_v35  ;;  %v1195_v34 = vld [vmem:[%s1947_s3 + $0x60] sm:$0xf]  ;;  %v1354_v35 = vld [vmem:[%s1947_s3 + $0x64] sm:$0xf0]  ;;  %v1181_v6 = vld [vmem:[%s1947_s3 + $0x48] sm:$0xf0] }
  0x2a   :  { %436 = vmatpush.bf16.msrb.mxu0 %v1065_v55  ;;  %v1196_v40 = vor.u32 %v1354_v35, %v1195_v34  ;;  %v1347_v11 = vld [vmem:[%s1947_s3 + $0x34] sm:$0xf]  ;;  %v1173_v12 = vld [vmem:[%s1947_s3 + $0x38] sm:$0xf0]  ;;  %v1163_v14 = vld [vmem:[%s1947_s3 + $0x20] sm:$0xf] }
  0x2b   :  { %473 = vmatpush.bf16.msrb.mxu1 %v1085_v4  ;;  %v1192_v4 = vor.u32 %v1351_v59, %v1189_v60  ;;  %v1346_v15 = vld [vmem:[%s1947_s3 + $0x24] sm:$0xf0]  ;;  %v1165_v18 = vld [vmem:[%s1947_s3 + $0x28] sm:$0xf0]  ;;  %v1344_v21 = vld [vmem:[%s1947_s3 + $0x14] sm:$0xf0] }
  0x2c   :  { %v1164_v17 = vor.u32 %v1346_v15, %v1163_v14  ;;  %v1343_v22 = vld [vmem:[%s1947_s3 + $0x14] sm:$0xf]  ;;  %v1147_v26 = vld [vmem:[%s1947_s3] sm:$0xf]  ;;  %v1342_v27 = vld [vmem:[%s1947_s3 + $0x4] sm:$0xf0] }
  0x2d   :  { %424 = vmatpush.bf16.msrb.mxu3 %v993_v39  ;;  %463 = vmatpush.bf16.msrb.mxu2 %v997_v44  ;;  %v1205_v39 = vld [vmem:[%s1947_s3 + $0x78] sm:$0xf0]  ;;  %v51_v44 = vperm.slane %v31_v29, 2  ;;  %v1148_v29 = vor.u32 %v1342_v27, %v1147_v26  ;;  %v1219_v32 = vld [vmem:[%s1947_s3 + $0x90] sm:$0xf]  ;;  %v1361_v14 = vld [vmem:[%s1948_s4] sm:$0xff] }
  0x2e   :  { %437 = vmatpush.bf16.msrb.mxu0 %v1057_v63  ;;  %v1208_v46 = vor.u32 %v1355_v38, %v1205_v39  ;;  %v1359_v35 = vld [vmem:[%s1947_s3 + $0x94] sm:$0xf]  ;;  %v1211_v38 = vld [vmem:[%s1947_s3 + $0x80] sm:$0xf]  ;;  %v1358_v39 = vld [vmem:[%s1947_s3 + $0x84] sm:$0xf0] }
  0x2f   :  { %474 = vmatpush.bf16.msrb.mxu1 %v1077_v13  ;;  %v1176_v13 = vor.u32 %v1347_v11, %v1173_v12  ;;  %v1212_v41 = vor.u32 %v1358_v39, %v1211_v38  ;;  %v1213_v42 = vld [vmem:[%s1947_s3 + $0x88] sm:$0xf0]  ;;  %v1363_v11 = vld [vmem:[%s1948_s4 + $0x10] sm:$0xff]  ;;  %v1369_v12 = vld [vmem:[%s1948_s4 + $0x40] sm:$0xff] }
  0x30   :  { %v1371_v38 = vld [vmem:[%s1949_s5] sm:$0xff] }
  0x31   :  { %425 = vmatpush.bf16.msrb.mxu3 %v985_v51  ;;  %464 = vmatpush.bf16.msrb.mxu2 %v989_v56  ;;  %v1179_v51 = vld [vmem:[%s1947_s3 + $0x40] sm:$0xf] }
  0x32   :  { %438 = vmatpush.bf16.msrb.mxu0 %v1049_v8  ;;  %v1180_v61 = vor.u32 %v1350_v52, %v1179_v51 }
  0x33   :  { %475 = vmatpush.bf16.msrb.mxu1 %v1069_v20  ;;  %v1155_v20 = vld [vmem:[%s1947_s3 + $0x10] sm:$0xf] }
  0x34   :  { %v1156_v23 = vor.u32 %v1344_v21, %v1155_v20 }
  0x35   :  { %487 = vmatpush.bf16.msra.mxu3 %v1141_v1  ;;  %v1348_v1 = vld [vmem:[%s1947_s3 + $0x34] sm:$0xf0] }
  0x36   :  { %631 = vmatpush.bf16.msra.mxu0 %v1204_v33  ;;  %v1172_v7 = vor.u32 %v1348_v1, %v1171_v0  ;;  %v1360_v33 = vld [vmem:[%s1947_s3 + $0x94] sm:$0xf0] }
  0x37   :  { %476 = vmatpush.bf16.msrb.mxu1 %v1061_v25  ;;  %v1220_v34 = vor.u32 %v1360_v33, %v1219_v32 }
  0x39   :  { %488 = vmatpush.bf16.msra.mxu3 %v1133_v10  ;;  %v1184_v10 = vor.u32 %v1349_v5, %v1181_v6  ;;  %650 = vmatpush.bf16.msra.mxu2 %v1220_v34  ;;  %v1367_v6 = vld [vmem:[%s1948_s4 + $0x30] sm:$0xff]  ;;  %v1375_v34 = vld [vmem:[%s1949_s5 + $0x20] sm:$0xff] }
  0x3a   :  { %632 = vmatpush.bf16.msra.mxu0 %v1196_v40  ;;  %v1357_v40 = vld [vmem:[%s1947_s3 + $0x84] sm:$0xf] }
  0x3b   :  { %477 = vmatpush.bf16.msrb.mxu1 %v1053_v28  ;;  %v1341_v28 = vld [vmem:[%s1947_s3 + $0x4] sm:$0xf] }
  0x3d   :  { %489 = vmatpush.bf16.msra.mxu3 %v1125_v16  ;;  %v1345_v16 = vld [vmem:[%s1947_s3 + $0x24] sm:$0xf]  ;;  %651 = vmatpush.bf16.msra.mxu2 %v1212_v41  ;;  %v687_v41 = vld [vmem:[%s1946_s6 + $0x3] ss:$0 sm:$0xff] }
  0x3e   :  { %633 = vmatpush.bf16.msra.mxu0 %v1188_v50  ;;  %v1168_v19 = vor.u32 %v1345_v16, %v1165_v18  ;;  %v1144_v18 = vld [vmem:[%s1946_s6 + $0x2] ss:$8 sm:$0x3] }
  0x41   :  { %490 = vmatpush.bf16.msra.mxu3 %v1117_v24  ;;  %v1157_v24 = vld [vmem:[%s1947_s3 + $0x18] sm:$0xf0] }
  0x42   :  { %634 = vmatpush.bf16.msra.mxu0 %v1180_v61  ;;  %v1160_v25 = vor.u32 %v1343_v22, %v1157_v24 }
  0x46   :  { %635 = vmatpush.bf16.msra.mxu0 %v1172_v7  ;;  %v1366_v7 = vld [vmem:[%s1948_s4 + $0x28] sm:$0xff] }
  0x4a   :  { %636 = vmatpush.bf16.msra.mxu0 %v1164_v17 }
  0x4e   :  { %637 = vmatpush.bf16.msra.mxu0 %v1156_v23  ;;  %v523_v23 = vperm.slane %v1144_v18, 0 }
  0x52   :  { %638 = vmatpush.bf16.msra.mxu0 %v1148_v29 }
  0x90   :  { %v132_v36 = vpop.f32.mrf.mxu0 }
  0x91   :  { %v133_v37 = vadd.f32 %v132_v36, %v49_v30  ;;  %v1149_v30 = vld [vmem:[%s1947_s3 + $0x8] sm:$0xf0]  ;;  %v1221_v36 = vld [vmem:[%s1947_s3 + $0x98] sm:$0xf0] }
  0x92   :  { %v1152_v31 = vor.u32 %v1341_v28, %v1149_v30 }
  0x93   :  { %v162_v43 = vmax.f32 %v133_v37, 0.0  ;;  %v1224_v37 = vor.u32 %v1359_v35, %v1221_v36  ;;  %v1374_v35 = vld [vmem:[%s1949_s5 + $0x18] sm:$0xff]  ;;  %v1373_v36 = vld [vmem:[%s1949_s5 + $0x10] sm:$0xff] }
  0x95   :  { %v165_v47 = vpack.c.bf16 %v162_v43, %v162_v43  ;;  %v1216_v43 = vor.u32 %v1357_v40, %v1213_v42 }
  0x97   :  { %v158_v53 = vpop.f32.mrf.mxu2  ;;  %426 = vmatmul.bf16.vlgmr.msrb.gmra.mxu3 %v165_v47  ;;  %465 = vmatmul.bf16.vlgmr.msrb.gmra.mxu2 %v165_v47  ;;  %v145_v54 = vpop.f32.mrf.mxu3 }
  0x98   :  { %v159_v55 = vadd.f32 %v158_v53, %v51_v44  ;;  %v134_v56 = vpop.f32.mrf.mxu0  ;;  %v146_v57 = vadd.f32 %v145_v54, %v50_v45  ;;  %657 = vmatpush.bf16.msrb.mxu3 %v1208_v46  ;;  %v981_v44 = vld [vmem:[%s1946_s6 + $0x1] ss:$8 sm:$0x3]  ;;  %v1368_v45 = vld [vmem:[%s1948_s4 + $0x38] sm:$0xff] }
  0x99   :  { %771 = vmatpush.bf16.msrb.mxu2 %v1368_v45  ;;  %v211_v46 = vperm.slane %v981_v44, 0  ;;  %v212_v60 = vperm.slane %v981_v44, 1 }
  0x9a   :  { %v164_v62 = vmax.f32 %v159_v55, 0.0  ;;  %v163_v63 = vmax.f32 %v146_v57, 0.0 }
  0x9c   :  { %v167_v2 = vpack.c.bf16 %v164_v62, %v164_v62  ;;  %v166_v3 = vpack.c.bf16 %v163_v63, %v163_v63  ;;  %658 = vmatpush.bf16.msrb.mxu3 %v1200_v58 }
  0x9d   :  { %772 = vmatpush.bf16.msrb.mxu2 %v1367_v6 }
  0x9e   :  { %1142 = vmatmul.msk.bf16.vlgmr.msra.gmra.mxu1 %vm119_vm0, %v167_v2  ;;  %439 = vmatmul.bf16.vlgmr.msrb.gmra.mxu0 %v166_v3 }
  0x9f   :  { %v160_v8 = vpop.f32.mrf.mxu2  ;;  %v147_v9 = vpop.f32.mrf.mxu3  ;;  %676 = vmatpush.bf16.msra.mxu1 %v1224_v37  ;;  %v1372_v37 = vld [vmem:[%s1949_s5 + $0x8] sm:$0xff] }
  0xa0   :  { %659 = vmatpush.bf16.msrb.mxu3 %v1192_v4  ;;  %v1365_v8 = vld [vmem:[%s1948_s4 + $0x20] sm:$0xff]  ;;  %v1364_v9 = vld [vmem:[%s1948_s4 + $0x18] sm:$0xff] }
  0xa1   :  { %773 = vmatpush.bf16.msrb.mxu2 %v1366_v7 }
  0xa3   :  { %677 = vmatpush.bf16.msra.mxu1 %v1216_v43 }
  0xa4   :  { %660 = vmatpush.bf16.msrb.mxu3 %v1184_v10  ;;  %v1370_v10 = vld [vmem:[%s1948_s4 + $0x48] sm:$0xff] }
  0xa5   :  { %774 = vmatpush.bf16.msrb.mxu2 %v1365_v8  ;;  %790 = vmatpush.bf16.msrb.mxu0 %v1370_v10 }
  0xa7   :  { %1143 = vmatmul.msk.bf16.vlgmr.msra.gmra.mxu3 %vm119_vm0, %v167_v2 }
  0xa8   :  { %661 = vmatpush.bf16.msrb.mxu3 %v1176_v13  ;;  %v1362_v13 = vld [vmem:[%s1948_s4 + $0x8] sm:$0xff] }
  0xa9   :  { %775 = vmatpush.bf16.msrb.mxu2 %v1364_v9  ;;  %791 = vmatpush.bf16.msrb.mxu0 %v1369_v12 }
  0xac   :  { %662 = vmatpush.bf16.msrb.mxu3 %v1168_v19  ;;  %v524_v19 = vperm.slane %v1144_v18, 1 }
  0xad   :  { %776 = vmatpush.bf16.msrb.mxu2 %v1363_v11 }
  0xae   :  { %478 = vmatmul.bf16.vlgmr.msrb.gmra.mxu1 %v166_v3 }
  0xaf   :  { %847 = vmatpush.bf16.msrb.mxu1 %v1375_v34 }
  0xb0   :  { %663 = vmatpush.bf16.msrb.mxu3 %v1160_v25 }
  0xb1   :  { %777 = vmatpush.bf16.msrb.mxu2 %v1362_v13 }
  0xb3   :  { %848 = vmatpush.bf16.msrb.mxu1 %v1374_v35 }
  0xb4   :  { %664 = vmatpush.bf16.msrb.mxu3 %v1152_v31 }
  0xb5   :  { %778 = vmatpush.bf16.msrb.mxu2 %v1361_v14 }
  0xb7   :  { %849 = vmatpush.bf16.msrb.mxu1 %v1373_v36 }
  0xbb   :  { %850 = vmatpush.bf16.msrb.mxu1 %v1372_v37 }
  0xbf   :  { %851 = vmatpush.bf16.msrb.mxu1 %v1371_v38 }
 0x11a   :  { %v427_v47 = vpop.f32.mrf.mxu3  ;;  %v466_v48 = vpop.f32.mrf.mxu2 }
 0x11b   :  { %v428_v49 = vadd.f32 %v427_v47, %v211_v46  ;;  %v453_v50 = vpop.f32.mrf.mxu1  ;;  %v440_v51 = vpop.f32.mrf.mxu0  ;;  %v467_v61 = vadd.f32 %v466_v48, %v212_v60  ;;  %v799_v48 = vld [vmem:[%s1946_s6 + $0x4] ss:$0 sm:$0xff]  ;;  %s1380_s6 = smov 125  }
 0x11d   :  { %v441_v52 = vadd.f32 %v440_v51, %v428_v49  ;;  %v858_v49 = vld [vmem:[%s1950_s7] sm:$0xff]  ;;  %s1381_s7 = smov 127  }
 0x11e   :  { %v868_v8 = vperm.slane %v858_v49, 6 }
 0x11f   :  { %v454_v53 = vadd.f32 %v453_v50, %v441_v52  ;;  %v898_v52 = vperm.slane %v858_v49, 3 }
 0x121   :  { %v496_v54 = vmax.f32 %v454_v53, 0.0  ;;  %v872_v53 = vperm.slane %v858_v49, 1 }
 0x122   :  { %v429_v55 = vpop.f32.mrf.mxu3  ;;  %v468_v56 = vpop.f32.mrf.mxu2 }
 0x123   :  { %v498_v57 = vpack.c.bf16 %v496_v54, %v496_v54  ;;  %v455_v58 = vpop.f32.mrf.mxu1  ;;  %v442_v59 = vpop.f32.mrf.mxu0  ;;  %v859_v54 = vperm.slane %v858_v49, 0 }
 0x124   :  { %v911_v59 = vperm.slane %v858_v49, 4 }
 0x125   :  { %639 = vmatmul.bf16.vlgmr.msra.gmra.mxu0 %v498_v57  ;;  %665 = vmatmul.bf16.vlgmr.msrb.gmra.mxu3 %v498_v57 }
 0x12a   :  { %v492_v62 = vpop.f32.mrf.mxu3 }
 0x12b   :  { %v479_v63 = vpop.f32.mrf.mxu1 }
 0x12c   :  { %v480_v0 = vadd.f32 %v479_v63, %v467_v61  ;;  %v885_v63 = vperm.slane %v858_v49, 2 }
 0x12e   :  { %v493_v1 = vadd.f32 %v492_v62, %v480_v0 }
 0x130   :  { %v497_v2 = vmax.f32 %v493_v1, 0.0 }
 0x132   :  { %v499_v3 = vpack.c.bf16 %v497_v2, %v497_v2  ;;  %v494_v4 = vpop.f32.mrf.mxu3 }
 0x133   :  { %v481_v5 = vpop.f32.mrf.mxu1 }
 0x134   :  { %1225 = vmatmul.msk.bf16.vlgmr.msra.gmra.mxu2 %vm627_vm1, %v499_v3  ;;  %1226 = vmatmul.msk.bf16.vlgmr.msra.gmra.mxu1 %vm627_vm1, %v499_v3  ;;  %v865_v5 = vperm.slane %v858_v49, 5 }
 0x1a2   :  { %v640_v15 = vpop.f32.mrf.mxu0 }
 0x1a3   :  { %v641_v26 = vadd.f32 %v640_v15, %v523_v23 }
 0x1a8   :  { %v666_v16 = vpop.f32.mrf.mxu3 }
 0x1a9   :  { %v667_v20 = vadd.f32 %v666_v16, %v524_v19 }
 0x1aa   :  { %v642_v17 = vpop.f32.mrf.mxu0 }
 0x1b0   :  { %v668_v21 = vpop.f32.mrf.mxu3 }
 0x1b1   :  { %v679_v22 = vpop.f32.mrf.mxu1 }
 0x1b2   :  { %v680_v24 = vadd.f32 %v679_v22, %v667_v20 }
 0x1b4   :  { %v684_v25 = vmax.f32 %v680_v24, 0.0 }
 0x1b6   :  { %v686_v27 = vpack.c.bf16 %v684_v25, %v684_v25 }
 0x1b7   :  { %v653_v28 = vpop.f32.mrf.mxu2 }
 0x1b8   :  { %v654_v29 = vadd.f32 %v653_v28, %v641_v26  ;;  %1267 = vmatmul.msk.bf16.vlgmr.msrb.gmra.mxu0 %vm627_vm1, %v686_v27  ;;  %v870_v27 = vperm.slane %v858_v49, 7 }
 0x1b9   :  { %v681_v30 = vpop.f32.mrf.mxu1 }
 0x1ba   :  { %v683_v31 = vmax.f32 %v654_v29, 0.0 }
 0x1bc   :  { %v685_v32 = vpack.c.bf16 %v683_v31, %v683_v31 }
 0x1be   :  { %779 = vmatmul.bf16.vlgmr.msrb.gmra.mxu2 %v685_v32 }
 0x1bf   :  { %v655_v33 = vpop.f32.mrf.mxu2 }
 0x235   :  { %v793_v39 = vpop.f32.mrf.mxu0 }
 0x23d   :  { %v795_v40 = vpop.f32.mrf.mxu0 }
 0x241   :  { %v780_v42 = vpop.f32.mrf.mxu2 }
 0x242   :  { %v781_v43 = vadd.f32 %v780_v42, %v687_v41 }
 0x244   :  { %v794_v44 = vadd.f32 %v793_v39, %v781_v43 }
 0x246   :  { %v797_v45 = vmax.f32 %v794_v44, 0.0 }
 0x248   :  { %v798_v46 = vpack.c.bf16 %v797_v45, %v797_v45 }
 0x249   :  { %v782_v47 = vpop.f32.mrf.mxu2 }
 0x24a   :  { %1288 = vmatmul.msk.bf16.vlgmr.msrb.gmra.mxu1 %vm840_vm2, %v798_v46 }
 0x2c7   :  { %v853_v50 = vpop.f32.mrf.mxu1 }
 0x2c8   :  { %v854_v51 = vadd.f32 %v853_v50, %v799_v48 }
 0x2ca   :  { %v857_v55 = vmax.f32 %v854_v51, 0.0 }
 0x2cc   :  { %v899_v56 = vmul.f32 %v898_v52, %v857_v55  ;;  %v873_v57 = vmul.f32 %v872_v53, %v857_v55  ;;  %v860_v58 = vmul.f32 %v859_v54, %v857_v55  ;;  %v912_v1 = vmul.f32 %v911_v59, %v857_v55 }
 0x2cd   :  { %v886_v2 = vmul.f32 %v885_v63, %v857_v55 }
 0x2ce   :  { %v900_v60 = vsel %vm861_vm3, %v899_v56, 0.0  ;;  %v874_v61 = vsel %vm861_vm3, %v873_v57, 0.0  ;;  %v862_v62 = vsel %vm861_vm3, %v860_v58, 0.0  ;;  %v913_v3 = vsel %vm861_vm3, %v912_v1, 0.0 }
 0x2cf   :  { %v855_v0 = vpop.f32.mrf.mxu1  ;;  %901 = vadd.xlane.f32.xlu1 %v900_v60  ;;  %875 = vadd.xlane.f32.xlu0 %v874_v61  ;;  %v887_v4 = vsel %vm861_vm3, %v886_v2, 0.0 }
 0x2d0   :  { %863 = vadd.xlane.f32.xlu2 %v862_v62 }
 0x2d7   :  { %914 = vadd.xlane.f32.xlu1 %v913_v3  ;;  %888 = vadd.xlane.f32.xlu0 %v887_v4 }
 0x342   :  { %v902_v6 = vpop.xlane.xlu1 %901  ;;  %v876_v7 = vpop.xlane.xlu0 %875 }
 0x343   :  { %v903_v9 = vadd.f32 %v902_v6, %v865_v5  ;;  %v877_v10 = vadd.f32 %v876_v7, %v865_v5  ;;  %v864_v11 = vpop.xlane.xlu2 %863 }
 0x344   :  { %v866_v12 = vadd.f32 %v865_v5, %v864_v11 }
 0x345   :  { %v904_v13 = vmax.f32 %v903_v9, 0.0  ;;  %v878_v14 = vmax.f32 %v877_v10, 0.0 }
 0x346   :  { %v867_v15 = vmax.f32 %v866_v12, 0.0 }
 0x347   :  { %v905_v16 = vmul.f32 %v904_v13, %v868_v8  ;;  %v879_v17 = vmul.f32 %v878_v14, %v868_v8 }
 0x348   :  { %v869_v18 = vmul.f32 %v868_v8, %v867_v15 }
 0x349   :  { %907 = vrot.lane.b32.xlu1 %v905_v16, %s1380_s6  ;;  %881 = vrot.lane.b32.xlu2 %v879_v17, %s1381_s7 }
 0x34a   :  { %v915_v19 = vpop.xlane.xlu1 %914  ;;  %v889_v20 = vpop.xlane.xlu0 %888  ;;  %v871_v29 = vadd.f32 %v870_v27, %v869_v18 }
 0x34b   :  { %v916_v21 = vadd.f32 %v915_v19, %v865_v5  ;;  %v890_v22 = vadd.f32 %v889_v20, %v865_v5 }
 0x34d   :  { %v917_v23 = vmax.f32 %v916_v21, 0.0  ;;  %v891_v24 = vmax.f32 %v890_v22, 0.0 }
 0x34f   :  { %v918_v25 = vmul.f32 %v917_v23, %v868_v8  ;;  %v892_v26 = vmul.f32 %v891_v24, %v868_v8 }
 0x351   :  { %894 = vrot.lane.b32.xlu0 %v892_v26, %s1382_s19  ;;  %920 = vrot.lane.b32.xlu2 %v918_v25, %s1383_s20 }
 0x3a3   :  { %v882_v28 = vpop.permute.xlu2 %881 }
 0x3a4   :  { %v884_v30 = vadd.f32 %v882_v28, %v871_v29 }
 0x3ab   :  { %v921_v35 = vpop.permute.xlu2 %920 }
 0x3bb   :  { %v908_v33 = vpop.permute.xlu1 %907 }
 0x3c3   :  { %v895_v31 = vpop.permute.xlu0 %894 }
 0x3c4   :  { %v897_v32 = vadd.f32 %v895_v31, %v884_v30 }
 0x3c6   :  { %v910_v34 = vadd.f32 %v908_v33, %v897_v32 }
 0x3c8   :  { %v923_v36 = vadd.f32 %v921_v35, %v910_v34 }
 0x3ca   :  { %925 = vst.msk [vmem:[%s1951_s8] sm:$0xff] %vm924_vm4, %v923_v36 }

// kernel: _ann2_forward.1
= control target key start
LH: loop header
LB: loop body
LE: loop exit
PB: predicated region body
PF: predicated region fallthrough
CT: control target
= control target key end

     0   :  { %vm119_vm0 = vcmask 523264   ;;  %vm627_vm1 = vcmask 261120   ;;  %vm840_vm2 = vcmask 654336   ;;  %vm861_vm3 = vcmask 162816   ;;  %s1382_s19 = smov 126   ;;  %s1383_s20 = smov 124   ;;  %s1943_s1 = inlined_call_operand.vmem [shape: bf16[64,320], index: 1, kind: input, shape index: {}]   ;;  %s1944_s2 = inlined_call_operand.vmem [shape: bf16[320,160], index: 2, kind: input, shape index: {}]   ;;  %s1945_s0 = inlined_call_operand.vmem [shape: bf16[8,64], index: 0, kind: input, shape index: {}]   ;;  %s1946_s6 = inlined_call_operand.vmem [shape: f32[8,384], index: 6, kind: input, shape index: {}]   ;;  %s1947_s3 = inlined_call_operand.vmem [shape: bf16[160,160], index: 3, kind: input, shape index: {}]   ;;  %s1948_s4 = inlined_call_operand.vmem [shape: bf16[160,80], index: 4, kind: input, shape index: {}]   ;;  %s1949_s5 = inlined_call_operand.vmem [shape: bf16[80,20], index: 5, kind: input, shape index: {}]   ;;  %s1950_s7 = inlined_call_operand.vmem [shape: f32[8,128], index: 7, kind: input, shape index: {}]   ;;  %s1951_s8 = inlined_call_operand.vmem [shape: f32[8,1], index: 8, kind: output, shape index: {}]  }
   0x1   :  { %v968_v0 = vld [vmem:[%s1943_s1 + $0x48] sm:$0xf]  ;;  %v1299_v1 = vld [vmem:[%s1943_s1 + $0x50] sm:$0xf0]  ;;  %v976_v2 = vld [vmem:[%s1943_s1 + $0x50] sm:$0xf] }
   0x2   :  { %v969_v3 = vor.u32 %v1299_v1, %v968_v0  ;;  %v1300_v4 = vld [vmem:[%s1943_s1 + $0x58] sm:$0xf0]  ;;  %v1298_v5 = vld [vmem:[%s1943_s1 + $0x4c] sm:$0xf]  ;;  %v970_v6 = vld [vmem:[%s1943_s1 + $0x54] sm:$0xf0] }
   0x3   :  { %v977_v7 = vor.u32 %v1300_v4, %v976_v2  ;;  %v973_v8 = vor.u32 %v1298_v5, %v970_v6  ;;  %v956_v9 = vld [vmem:[%s1943_s1 + $0x30] sm:$0xf]  ;;  %v1296_v10 = vld [vmem:[%s1943_s1 + $0x38] sm:$0xf0]  ;;  %v964_v11 = vld [vmem:[%s1943_s1 + $0x38] sm:$0xf] }
   0x4   :  { %127 = vmatpush.bf16.msra.mxu0 %v969_v3  ;;  %v957_v12 = vor.u32 %v1296_v10, %v956_v9  ;;  %v1297_v13 = vld [vmem:[%s1943_s1 + $0x40] sm:$0xf0]  ;;  %v1295_v14 = vld [vmem:[%s1943_s1 + $0x34] sm:$0xf]  ;;  %v958_v15 = vld [vmem:[%s1943_s1 + $0x3c] sm:$0xf0] }
   0x5   :  { %153 = vmatpush.bf16.msra.mxu2 %v977_v7  ;;  %140 = vmatpush.bf16.msra.mxu3 %v973_v8  ;;  %v965_v16 = vor.u32 %v1297_v13, %v964_v11  ;;  %v961_v17 = vor.u32 %v1295_v14, %v958_v15  ;;  %v944_v18 = vld [vmem:[%s1943_s1 + $0x18] sm:$0xf]  ;;  %v1293_v19 = vld [vmem:[%s1943_s1 + $0x20] sm:$0xf0]  ;;  %v952_v20 = vld [vmem:[%s1943_s1 + $0x20] sm:$0xf] }
   0x6   :  { %v1294_v21 = vld [vmem:[%s1943_s1 + $0x28] sm:$0xf0]  ;;  %v1292_v22 = vld [vmem:[%s1943_s1 + $0x1c] sm:$0xf]  ;;  %v946_v23 = vld [vmem:[%s1943_s1 + $0x24] sm:$0xf0]  ;;  %v945_v24 = vor.u32 %v1293_v19, %v944_v18 }
   0x7   :  { %v932_v25 = vld [vmem:[%s1943_s1] sm:$0xf]  ;;  %v953_v26 = vor.u32 %v1294_v21, %v952_v20  ;;  %v949_v27 = vor.u32 %v1292_v22, %v946_v23  ;;  %v1290_v28 = vld [vmem:[%s1943_s1 + $0x8] sm:$0xf0]  ;;  %v940_v29 = vld [vmem:[%s1943_s1 + $0x8] sm:$0xf] }
   0x8   :  { %128 = vmatpush.bf16.msra.mxu0 %v957_v12  ;;  %v1291_v30 = vld [vmem:[%s1943_s1 + $0x10] sm:$0xf0]  ;;  %v1289_v31 = vld [vmem:[%s1943_s1 + $0x4] sm:$0xf]  ;;  %v934_v32 = vld [vmem:[%s1943_s1 + $0xc] sm:$0xf0]  ;;  %v933_v37 = vor.u32 %v1290_v28, %v932_v25 }
   0x9   :  { %154 = vmatpush.bf16.msra.mxu2 %v965_v16  ;;  %141 = vmatpush.bf16.msra.mxu3 %v961_v17  ;;  %v1040_v33 = vld [vmem:[%s1944_s2 + $0x70] sm:$0xf]  ;;  %v1316_v34 = vld [vmem:[%s1944_s2 + $0x74] sm:$0xf0]  ;;  %v1315_v35 = vld [vmem:[%s1944_s2 + $0x74] sm:$0xf]  ;;  %v941_v38 = vor.u32 %v1291_v30, %v940_v29  ;;  %v937_v39 = vor.u32 %v1289_v31, %v934_v32 }
   0xa   :  { %v1042_v36 = vld [vmem:[%s1944_s2 + $0x78] sm:$0xf0]  ;;  %v1032_v40 = vld [vmem:[%s1944_s2 + $0x60] sm:$0xf]  ;;  %v1104_v41 = vld [vmem:[%s1944_s2 + $0xf0] sm:$0xf]  ;;  %v1041_v42 = vor.u32 %v1316_v34, %v1040_v33 }
   0xb   :  { %v1045_v43 = vor.u32 %v1315_v35, %v1042_v36  ;;  %v1332_v44 = vld [vmem:[%s1944_s2 + $0xf4] sm:$0xf0]  ;;  %v1136_v45 = vld [vmem:[%s1944_s2 + $0x130] sm:$0xf]  ;;  %v1314_v47 = vld [vmem:[%s1944_s2 + $0x64] sm:$0xf0] }
   0xc   :  { %129 = vmatpush.bf16.msra.mxu0 %v945_v24  ;;  %v1340_v46 = vld [vmem:[%s1944_s2 + $0x134] sm:$0xf0]  ;;  %v1313_v48 = vld [vmem:[%s1944_s2 + $0x64] sm:$0xf]  ;;  %v1034_v49 = vld [vmem:[%s1944_s2 + $0x68] sm:$0xf0]  ;;  %v1105_v53 = vor.u32 %v1332_v44, %v1104_v41  ;;  %v1033_v55 = vor.u32 %v1314_v47, %v1032_v40 }
   0xd   :  { %155 = vmatpush.bf16.msra.mxu2 %v953_v26  ;;  %142 = vmatpush.bf16.msra.mxu3 %v949_v27  ;;  %v1137_v50 = vor.u32 %v1340_v46, %v1136_v45  ;;  %v30_v51 = vld [vmem:[%s1945_s0] sm:$0xf]  ;;  %v1338_v54 = vld [vmem:[%s1944_s2 + $0x124] sm:$0xf0]  ;;  %v1037_v56 = vor.u32 %v1313_v48, %v1034_v49  ;;  %v1024_v57 = vld [vmem:[%s1944_s2 + $0x50] sm:$0xf] }
   0xe   :  { %v1128_v52 = vld [vmem:[%s1944_s2 + $0x120] sm:$0xf]  ;;  %v1330_v59 = vld [vmem:[%s1944_s2 + $0xe4] sm:$0xf0]  ;;  %v1312_v60 = vld [vmem:[%s1944_s2 + $0x54] sm:$0xf0] }
   0xf   :  { %v1096_v58 = vld [vmem:[%s1944_s2 + $0xe0] sm:$0xf]  ;;  %v1311_v61 = vld [vmem:[%s1944_s2 + $0x54] sm:$0xf]  ;;  %v1026_v62 = vld [vmem:[%s1944_s2 + $0x58] sm:$0xf0]  ;;  %448 = vmatpush.bf16.msra.mxu1 %v1137_v50  ;;  %v1129_v63 = vor.u32 %v1338_v54, %v1128_v52  ;;  %v1025_v3 = vor.u32 %v1312_v60, %v1024_v57 }
  0x10   :  { %130 = vmatpush.bf16.msra.mxu0 %v933_v37  ;;  %v1120_v0 = vld [vmem:[%s1944_s2 + $0x110] sm:$0xf]  ;;  %v1336_v1 = vld [vmem:[%s1944_s2 + $0x114] sm:$0xf0]  ;;  %v1097_v2 = vor.u32 %v1330_v59, %v1096_v58  ;;  %v1029_v4 = vor.u32 %v1311_v61, %v1026_v62  ;;  %v1016_v5 = vld [vmem:[%s1944_s2 + $0x40] sm:$0xf] }
  0x11   :  { %156 = vmatpush.bf16.msra.mxu2 %v941_v38  ;;  %143 = vmatpush.bf16.msra.mxu3 %v937_v39  ;;  %v1088_v6 = vld [vmem:[%s1944_s2 + $0xd0] sm:$0xf]  ;;  %v1328_v7 = vld [vmem:[%s1944_s2 + $0xd4] sm:$0xf0]  ;;  %v1310_v8 = vld [vmem:[%s1944_s2 + $0x44] sm:$0xf0]  ;;  %v1121_v11 = vor.u32 %v1336_v1, %v1120_v0 }
  0x12   :  { %v1309_v9 = vld [vmem:[%s1944_s2 + $0x44] sm:$0xf]  ;;  %v1018_v10 = vld [vmem:[%s1944_s2 + $0x48] sm:$0xf0]  ;;  %v1112_v12 = vld [vmem:[%s1944_s2 + $0x100] sm:$0xf]  ;;  %v1089_v14 = vor.u32 %v1328_v7, %v1088_v6  ;;  %v1017_v17 = vor.u32 %v1310_v8, %v1016_v5 }
  0x13   :  { %978 = vmatmul.msk.bf16.vlgmr.msra.gmra.mxu0 %vm119_vm0, %v30_v51  ;;  %449 = vmatpush.bf16.msra.mxu1 %v1129_v63  ;;  %v1334_v13 = vld [vmem:[%s1944_s2 + $0x104] sm:$0xf0]  ;;  %v1331_v15 = vld [vmem:[%s1944_s2 + $0xf4] sm:$0xf]  ;;  %v1106_v16 = vld [vmem:[%s1944_s2 + $0xf8] sm:$0xf0]  ;;  %v1021_v18 = vor.u32 %v1309_v9, %v1018_v10 }
  0x14   :  { %980 = vmatmul.msk.bf16.vlgmr.msra.gmra.mxu2 %vm119_vm0, %v30_v51  ;;  %979 = vmatmul.msk.bf16.vlgmr.msra.gmra.mxu3 %vm119_vm0, %v30_v51  ;;  %v1008_v19 = vld [vmem:[%s1944_s2 + $0x30] sm:$0xf]  ;;  %v1080_v20 = vld [vmem:[%s1944_s2 + $0xc0] sm:$0xf]  ;;  %v1326_v21 = vld [vmem:[%s1944_s2 + $0xc4] sm:$0xf0]  ;;  %v1113_v25 = vor.u32 %v1334_v13, %v1112_v12  ;;  %v1109_v26 = vor.u32 %v1331_v15, %v1106_v16 }
  0x15   :  { %418 = vmatpush.bf16.msrb.mxu3 %v1041_v42  ;;  %457 = vmatpush.bf16.msrb.mxu2 %v1045_v43  ;;  %v1308_v22 = vld [vmem:[%s1944_s2 + $0x34] sm:$0xf0]  ;;  %v1307_v23 = vld [vmem:[%s1944_s2 + $0x34] sm:$0xf]  ;;  %v1010_v24 = vld [vmem:[%s1944_s2 + $0x38] sm:$0xf0]  ;;  %v1081_v27 = vor.u32 %v1326_v21, %v1080_v20 }
  0x16   :  { %431 = vmatpush.bf16.msrb.mxu0 %v1105_v53  ;;  %v1009_v28 = vor.u32 %v1308_v22, %v1008_v19  ;;  %v1013_v29 = vor.u32 %v1307_v23, %v1010_v24  ;;  %v1000_v30 = vld [vmem:[%s1944_s2 + $0x20] sm:$0xf]  ;;  %v1306_v31 = vld [vmem:[%s1944_s2 + $0x24] sm:$0xf0]  ;;  %v1305_v32 = vld [vmem:[%s1944_s2 + $0x24] sm:$0xf] }
  0x17   :  { %450 = vmatpush.bf16.msra.mxu1 %v1121_v11  ;;  %v1002_v33 = vld [vmem:[%s1944_s2 + $0x28] sm:$0xf0]  ;;  %v1001_v34 = vor.u32 %v1306_v31, %v1000_v30  ;;  %v992_v36 = vld [vmem:[%s1944_s2 + $0x10] sm:$0xf]  ;;  %v1304_v37 = vld [vmem:[%s1944_s2 + $0x14] sm:$0xf0] }
  0x18   :  { %v1005_v35 = vor.u32 %v1305_v32, %v1002_v33  ;;  %v1072_v38 = vld [vmem:[%s1944_s2 + $0xb0] sm:$0xf]  ;;  %v993_v39 = vor.u32 %v1304_v37, %v992_v36  ;;  %v1324_v40 = vld [vmem:[%s1944_s2 + $0xb4] sm:$0xf0]  ;;  %v1303_v41 = vld [vmem:[%s1944_s2 + $0x14] sm:$0xf] }
  0x19   :  { %419 = vmatpush.bf16.msrb.mxu3 %v1033_v55  ;;  %458 = vmatpush.bf16.msrb.mxu2 %v1037_v56  ;;  %v994_v42 = vld [vmem:[%s1944_s2 + $0x18] sm:$0xf0]  ;;  %v1073_v43 = vor.u32 %v1324_v40, %v1072_v38  ;;  %v1329_v45 = vld [vmem:[%s1944_s2 + $0xe4] sm:$0xf]  ;;  %v1098_v46 = vld [vmem:[%s1944_s2 + $0xe8] sm:$0xf0] }
  0x1a   :  { %432 = vmatpush.bf16.msrb.mxu0 %v1097_v2  ;;  %v997_v44 = vor.u32 %v1303_v41, %v994_v42  ;;  %v1101_v47 = vor.u32 %v1329_v45, %v1098_v46  ;;  %v984_v48 = vld [vmem:[%s1944_s2] sm:$0xf]  ;;  %v1302_v49 = vld [vmem:[%s1944_s2 + $0x4] sm:$0xf0]  ;;  %v1301_v53 = vld [vmem:[%s1944_s2 + $0x4] sm:$0xf] }
  0x1b   :  { %451 = vmatpush.bf16.msra.mxu1 %v1113_v25  ;;  %v1064_v50 = vld [vmem:[%s1944_s2 + $0xa0] sm:$0xf]  ;;  %v985_v51 = vor.u32 %v1302_v49, %v984_v48  ;;  %v1322_v52 = vld [vmem:[%s1944_s2 + $0xa4] sm:$0xf0]  ;;  %v986_v54 = vld [vmem:[%s1944_s2 + $0x8] sm:$0xf0] }
  0x1c   :  { %v1065_v55 = vor.u32 %v1322_v52, %v1064_v50  ;;  %v989_v56 = vor.u32 %v1301_v53, %v986_v54  ;;  %v1327_v57 = vld [vmem:[%s1944_s2 + $0xd4] sm:$0xf]  ;;  %v1090_v58 = vld [vmem:[%s1944_s2 + $0xd8] sm:$0xf0]  ;;  %v1056_v60 = vld [vmem:[%s1944_s2 + $0x90] sm:$0xf] }
  0x1d   :  { %420 = vmatpush.bf16.msrb.mxu3 %v1025_v3  ;;  %459 = vmatpush.bf16.msrb.mxu2 %v1029_v4  ;;  %v1093_v59 = vor.u32 %v1327_v57, %v1090_v58  ;;  %v1320_v61 = vld [vmem:[%s1944_s2 + $0x94] sm:$0xf0]  ;;  %v1339_v62 = vld [vmem:[%s1944_s2 + $0x134] sm:$0xf]  ;;  %v1138_v0 = vld [vmem:[%s1944_s2 + $0x138] sm:$0xf0] }
  0x1e   :  { %433 = vmatpush.bf16.msrb.mxu0 %v1089_v14  ;;  %v1057_v63 = vor.u32 %v1320_v61, %v1056_v60  ;;  %v1141_v1 = vor.u32 %v1339_v62, %v1138_v0  ;;  %v1325_v2 = vld [vmem:[%s1944_s2 + $0xc4] sm:$0xf]  ;;  %v1082_v3 = vld [vmem:[%s1944_s2 + $0xc8] sm:$0xf0]  ;;  %v1048_v5 = vld [vmem:[%s1944_s2 + $0x80] sm:$0xf] }
  0x1f   :  { %470 = vmatpush.bf16.msrb.mxu1 %v1109_v26  ;;  %v1085_v4 = vor.u32 %v1325_v2, %v1082_v3  ;;  %v1318_v6 = vld [vmem:[%s1944_s2 + $0x84] sm:$0xf0]  ;;  %v1337_v7 = vld [vmem:[%s1944_s2 + $0x124] sm:$0xf]  ;;  %v1130_v9 = vld [vmem:[%s1944_s2 + $0x128] sm:$0xf0] }
  0x20   :  { %v1049_v8 = vor.u32 %v1318_v6, %v1048_v5  ;;  %v1133_v10 = vor.u32 %v1337_v7, %v1130_v9  ;;  %v1323_v11 = vld [vmem:[%s1944_s2 + $0xb4] sm:$0xf]  ;;  %v1074_v12 = vld [vmem:[%s1944_s2 + $0xb8] sm:$0xf0]  ;;  %v1333_v19 = vld [vmem:[%s1944_s2 + $0x104] sm:$0xf] }
  0x21   :  { %421 = vmatpush.bf16.msrb.mxu3 %v1017_v17  ;;  %460 = vmatpush.bf16.msrb.mxu2 %v1021_v18  ;;  %v1077_v13 = vor.u32 %v1323_v11, %v1074_v12  ;;  %v1335_v14 = vld [vmem:[%s1944_s2 + $0x114] sm:$0xf]  ;;  %v1122_v15 = vld [vmem:[%s1944_s2 + $0x118] sm:$0xf0]  ;;  %v1321_v17 = vld [vmem:[%s1944_s2 + $0xa4] sm:$0xf] }
  0x22   :  { %434 = vmatpush.bf16.msrb.mxu0 %v1081_v27  ;;  %v1125_v16 = vor.u32 %v1335_v14, %v1122_v15  ;;  %v1066_v18 = vld [vmem:[%s1944_s2 + $0xa8] sm:$0xf0]  ;;  %v1319_v22 = vld [vmem:[%s1944_s2 + $0x94] sm:$0xf]  ;;  %v1058_v23 = vld [vmem:[%s1944_s2 + $0x98] sm:$0xf0] }
  0x23   :  { %471 = vmatpush.bf16.msrb.mxu1 %v1101_v47  ;;  %v1069_v20 = vor.u32 %v1321_v17, %v1066_v18  ;;  %v1114_v21 = vld [vmem:[%s1944_s2 + $0x108] sm:$0xf0]  ;;  %v1061_v25 = vor.u32 %v1319_v22, %v1058_v23  ;;  %v1317_v26 = vld [vmem:[%s1944_s2 + $0x84] sm:$0xf]  ;;  %v1203_v31 = vld [vmem:[%s1947_s3 + $0x70] sm:$0xf] }
  0x24   :  { %v1117_v24 = vor.u32 %v1333_v19, %v1114_v21  ;;  %v1050_v27 = vld [vmem:[%s1944_s2 + $0x88] sm:$0xf0]  ;;  %v1356_v32 = vld [vmem:[%s1947_s3 + $0x74] sm:$0xf0]  ;;  %v1355_v38 = vld [vmem:[%s1947_s3 + $0x74] sm:$0xf] }
  0x25   :  { %422 = vmatpush.bf16.msrb.mxu3 %v1009_v28  ;;  %461 = vmatpush.bf16.msrb.mxu2 %v1013_v29  ;;  %v1053_v28 = vor.u32 %v1317_v26, %v1050_v27  ;;  %v31_v29 = vld [vmem:[%s1946_s6] ss:$8 sm:$0x7]  ;;  %v1204_v33 = vor.u32 %v1356_v32, %v1203_v31  ;;  %v1352_v42 = vld [vmem:[%s1947_s3 + $0x54] sm:$0xf0]  ;;  %vm924_vm4 = vcmask 7168  }
  0x26   :  { %435 = vmatpush.bf16.msrb.mxu0 %v1073_v43  ;;  %v49_v30 = vperm.slane %v31_v29, 0  ;;  %v1187_v41 = vld [vmem:[%s1947_s3 + $0x50] sm:$0xf]  ;;  %v50_v45 = vperm.slane %v31_v29, 1  ;;  %v1353_v48 = vld [vmem:[%s1947_s3 + $0x64] sm:$0xf] }
  0x27   :  { %472 = vmatpush.bf16.msrb.mxu1 %v1093_v59  ;;  %v1197_v49 = vld [vmem:[%s1947_s3 + $0x68] sm:$0xf0]  ;;  %v1188_v50 = vor.u32 %v1352_v42, %v1187_v41  ;;  %v1350_v52 = vld [vmem:[%s1947_s3 + $0x44] sm:$0xf0]  ;;  %v1351_v59 = vld [vmem:[%s1947_s3 + $0x54] sm:$0xf] }
  0x28   :  { %v1200_v58 = vor.u32 %v1353_v48, %v1197_v49  ;;  %v1189_v60 = vld [vmem:[%s1947_s3 + $0x58] sm:$0xf0]  ;;  %v1171_v0 = vld [vmem:[%s1947_s3 + $0x30] sm:$0xf]  ;;  %v1349_v5 = vld [vmem:[%s1947_s3 + $0x44] sm:$0xf] }
  0x29   :  { %423 = vmatpush.bf16.msrb.mxu3 %v1001_v34  ;;  %462 = vmatpush.bf16.msrb.mxu2 %v1005_v35  ;;  %v1195_v34 = vld [vmem:[%s1947_s3 + $0x60] sm:$0xf]  ;;  %v1354_v35 = vld [vmem:[%s1947_s3 + $0x64] sm:$0xf0]  ;;  %v1181_v6 = vld [vmem:[%s1947_s3 + $0x48] sm:$0xf0] }
  0x2a   :  { %436 = vmatpush.bf16.msrb.mxu0 %v1065_v55  ;;  %v1196_v40 = vor.u32 %v1354_v35, %v1195_v34  ;;  %v1347_v11 = vld [vmem:[%s1947_s3 + $0x34] sm:$0xf]  ;;  %v1173_v12 = vld [vmem:[%s1947_s3 + $0x38] sm:$0xf0]  ;;  %v1163_v14 = vld [vmem:[%s1947_s3 + $0x20] sm:$0xf] }
  0x2b   :  { %473 = vmatpush.bf16.msrb.mxu1 %v1085_v4  ;;  %v1192_v4 = vor.u32 %v1351_v59, %v1189_v60  ;;  %v1346_v15 = vld [vmem:[%s1947_s3 + $0x24] sm:$0xf0]  ;;  %v1165_v18 = vld [vmem:[%s1947_s3 + $0x28] sm:$0xf0]  ;;  %v1344_v21 = vld [vmem:[%s1947_s3 + $0x14] sm:$0xf0] }
  0x2c   :  { %v1164_v17 = vor.u32 %v1346_v15, %v1163_v14  ;;  %v1343_v22 = vld [vmem:[%s1947_s3 + $0x14] sm:$0xf]  ;;  %v1147_v26 = vld [vmem:[%s1947_s3] sm:$0xf]  ;;  %v1342_v27 = vld [vmem:[%s1947_s3 + $0x4] sm:$0xf0] }
  0x2d   :  { %424 = vmatpush.bf16.msrb.mxu3 %v993_v39  ;;  %463 = vmatpush.bf16.msrb.mxu2 %v997_v44  ;;  %v1205_v39 = vld [vmem:[%s1947_s3 + $0x78] sm:$0xf0]  ;;  %v51_v44 = vperm.slane %v31_v29, 2  ;;  %v1148_v29 = vor.u32 %v1342_v27, %v1147_v26  ;;  %v1219_v32 = vld [vmem:[%s1947_s3 + $0x90] sm:$0xf]  ;;  %v1361_v14 = vld [vmem:[%s1948_s4] sm:$0xff] }
  0x2e   :  { %437 = vmatpush.bf16.msrb.mxu0 %v1057_v63  ;;  %v1208_v46 = vor.u32 %v1355_v38, %v1205_v39  ;;  %v1359_v35 = vld [vmem:[%s1947_s3 + $0x94] sm:$0xf]  ;;  %v1211_v38 = vld [vmem:[%s1947_s3 + $0x80] sm:$0xf]  ;;  %v1358_v39 = vld [vmem:[%s1947_s3 + $0x84] sm:$0xf0] }
  0x2f   :  { %474 = vmatpush.bf16.msrb.mxu1 %v1077_v13  ;;  %v1176_v13 = vor.u32 %v1347_v11, %v1173_v12  ;;  %v1212_v41 = vor.u32 %v1358_v39, %v1211_v38  ;;  %v1213_v42 = vld [vmem:[%s1947_s3 + $0x88] sm:$0xf0]  ;;  %v1363_v11 = vld [vmem:[%s1948_s4 + $0x10] sm:$0xff]  ;;  %v1369_v12 = vld [vmem:[%s1948_s4 + $0x40] sm:$0xff] }
  0x30   :  { %v1371_v38 = vld [vmem:[%s1949_s5] sm:$0xff] }
  0x31   :  { %425 = vmatpush.bf16.msrb.mxu3 %v985_v51  ;;  %464 = vmatpush.bf16.msrb.mxu2 %v989_v56  ;;  %v1179_v51 = vld [vmem:[%s1947_s3 + $0x40] sm:$0xf] }
  0x32   :  { %438 = vmatpush.bf16.msrb.mxu0 %v1049_v8  ;;  %v1180_v61 = vor.u32 %v1350_v52, %v1179_v51 }
  0x33   :  { %475 = vmatpush.bf16.msrb.mxu1 %v1069_v20  ;;  %v1155_v20 = vld [vmem:[%s1947_s3 + $0x10] sm:$0xf] }
  0x34   :  { %v1156_v23 = vor.u32 %v1344_v21, %v1155_v20 }
  0x35   :  { %487 = vmatpush.bf16.msra.mxu3 %v1141_v1  ;;  %v1348_v1 = vld [vmem:[%s1947_s3 + $0x34] sm:$0xf0] }
  0x36   :  { %631 = vmatpush.bf16.msra.mxu0 %v1204_v33  ;;  %v1172_v7 = vor.u32 %v1348_v1, %v1171_v0  ;;  %v1360_v33 = vld [vmem:[%s1947_s3 + $0x94] sm:$0xf0] }
  0x37   :  { %476 = vmatpush.bf16.msrb.mxu1 %v1061_v25  ;;  %v1220_v34 = vor.u32 %v1360_v33, %v1219_v32 }
  0x39   :  { %488 = vmatpush.bf16.msra.mxu3 %v1133_v10  ;;  %v1184_v10 = vor.u32 %v1349_v5, %v1181_v6  ;;  %650 = vmatpush.bf16.msra.mxu2 %v1220_v34  ;;  %v1367_v6 = vld [vmem:[%s1948_s4 + $0x30] sm:$0xff]  ;;  %v1375_v34 = vld [vmem:[%s1949_s5 + $0x20] sm:$0xff] }
  0x3a   :  { %632 = vmatpush.bf16.msra.mxu0 %v1196_v40  ;;  %v1357_v40 = vld [vmem:[%s1947_s3 + $0x84] sm:$0xf] }
  0x3b   :  { %477 = vmatpush.bf16.msrb.mxu1 %v1053_v28  ;;  %v1341_v28 = vld [vmem:[%s1947_s3 + $0x4] sm:$0xf] }
  0x3d   :  { %489 = vmatpush.bf16.msra.mxu3 %v1125_v16  ;;  %v1345_v16 = vld [vmem:[%s1947_s3 + $0x24] sm:$0xf]  ;;  %651 = vmatpush.bf16.msra.mxu2 %v1212_v41  ;;  %v687_v41 = vld [vmem:[%s1946_s6 + $0x3] ss:$0 sm:$0xff] }
  0x3e   :  { %633 = vmatpush.bf16.msra.mxu0 %v1188_v50  ;;  %v1168_v19 = vor.u32 %v1345_v16, %v1165_v18  ;;  %v1144_v18 = vld [vmem:[%s1946_s6 + $0x2] ss:$8 sm:$0x3] }
  0x41   :  { %490 = vmatpush.bf16.msra.mxu3 %v1117_v24  ;;  %v1157_v24 = vld [vmem:[%s1947_s3 + $0x18] sm:$0xf0] }
  0x42   :  { %634 = vmatpush.bf16.msra.mxu0 %v1180_v61  ;;  %v1160_v25 = vor.u32 %v1343_v22, %v1157_v24 }
  0x46   :  { %635 = vmatpush.bf16.msra.mxu0 %v1172_v7  ;;  %v1366_v7 = vld [vmem:[%s1948_s4 + $0x28] sm:$0xff] }
  0x4a   :  { %636 = vmatpush.bf16.msra.mxu0 %v1164_v17 }
  0x4e   :  { %637 = vmatpush.bf16.msra.mxu0 %v1156_v23  ;;  %v523_v23 = vperm.slane %v1144_v18, 0 }
  0x52   :  { %638 = vmatpush.bf16.msra.mxu0 %v1148_v29 }
  0x90   :  { %v132_v36 = vpop.f32.mrf.mxu0 }
  0x91   :  { %v133_v37 = vadd.f32 %v132_v36, %v49_v30  ;;  %v1149_v30 = vld [vmem:[%s1947_s3 + $0x8] sm:$0xf0]  ;;  %v1221_v36 = vld [vmem:[%s1947_s3 + $0x98] sm:$0xf0] }
  0x92   :  { %v1152_v31 = vor.u32 %v1341_v28, %v1149_v30 }
  0x93   :  { %v162_v43 = vmax.f32 %v133_v37, 0.0  ;;  %v1224_v37 = vor.u32 %v1359_v35, %v1221_v36  ;;  %v1374_v35 = vld [vmem:[%s1949_s5 + $0x18] sm:$0xff]  ;;  %v1373_v36 = vld [vmem:[%s1949_s5 + $0x10] sm:$0xff] }
  0x95   :  { %v165_v47 = vpack.c.bf16 %v162_v43, %v162_v43  ;;  %v1216_v43 = vor.u32 %v1357_v40, %v1213_v42 }
  0x97   :  { %v158_v53 = vpop.f32.mrf.mxu2  ;;  %426 = vmatmul.bf16.vlgmr.msrb.gmra.mxu3 %v165_v47  ;;  %465 = vmatmul.bf16.vlgmr.msrb.gmra.mxu2 %v165_v47  ;;  %v145_v54 = vpop.f32.mrf.mxu3 }
  0x98   :  { %v159_v55 = vadd.f32 %v158_v53, %v51_v44  ;;  %v134_v56 = vpop.f32.mrf.mxu0  ;;  %v146_v57 = vadd.f32 %v145_v54, %v50_v45  ;;  %657 = vmatpush.bf16.msrb.mxu3 %v1208_v46  ;;  %v981_v44 = vld [vmem:[%s1946_s6 + $0x1] ss:$8 sm:$0x3]  ;;  %v1368_v45 = vld [vmem:[%s1948_s4 + $0x38] sm:$0xff] }
  0x99   :  { %771 = vmatpush.bf16.msrb.mxu2 %v1368_v45  ;;  %v211_v46 = vperm.slane %v981_v44, 0  ;;  %v212_v60 = vperm.slane %v981_v44, 1 }
  0x9a   :  { %v164_v62 = vmax.f32 %v159_v55, 0.0  ;;  %v163_v63 = vmax.f32 %v146_v57, 0.0 }
  0x9c   :  { %v167_v2 = vpack.c.bf16 %v164_v62, %v164_v62  ;;  %v166_v3 = vpack.c.bf16 %v163_v63, %v163_v63  ;;  %658 = vmatpush.bf16.msrb.mxu3 %v1200_v58 }
  0x9d   :  { %772 = vmatpush.bf16.msrb.mxu2 %v1367_v6 }
  0x9e   :  { %1142 = vmatmul.msk.bf16.vlgmr.msra.gmra.mxu1 %vm119_vm0, %v167_v2  ;;  %439 = vmatmul.bf16.vlgmr.msrb.gmra.mxu0 %v166_v3 }
  0x9f   :  { %v160_v8 = vpop.f32.mrf.mxu2  ;;  %v147_v9 = vpop.f32.mrf.mxu3  ;;  %676 = vmatpush.bf16.msra.mxu1 %v1224_v37  ;;  %v1372_v37 = vld [vmem:[%s1949_s5 + $0x8] sm:$0xff] }
  0xa0   :  { %659 = vmatpush.bf16.msrb.mxu3 %v1192_v4  ;;  %v1365_v8 = vld [vmem:[%s1948_s4 + $0x20] sm:$0xff]  ;;  %v1364_v9 = vld [vmem:[%s1948_s4 + $0x18] sm:$0xff] }
  0xa1   :  { %773 = vmatpush.bf16.msrb.mxu2 %v1366_v7 }
  0xa3   :  { %677 = vmatpush.bf16.msra.mxu1 %v1216_v43 }
  0xa4   :  { %660 = vmatpush.bf16.msrb.mxu3 %v1184_v10  ;;  %v1370_v10 = vld [vmem:[%s1948_s4 + $0x48] sm:$0xff] }
  0xa5   :  { %774 = vmatpush.bf16.msrb.mxu2 %v1365_v8  ;;  %790 = vmatpush.bf16.msrb.mxu0 %v1370_v10 }
  0xa7   :  { %1143 = vmatmul.msk.bf16.vlgmr.msra.gmra.mxu3 %vm119_vm0, %v167_v2 }
  0xa8   :  { %661 = vmatpush.bf16.msrb.mxu3 %v1176_v13  ;;  %v1362_v13 = vld [vmem:[%s1948_s4 + $0x8] sm:$0xff] }
  0xa9   :  { %775 = vmatpush.bf16.msrb.mxu2 %v1364_v9  ;;  %791 = vmatpush.bf16.msrb.mxu0 %v1369_v12 }
  0xac   :  { %662 = vmatpush.bf16.msrb.mxu3 %v1168_v19  ;;  %v524_v19 = vperm.slane %v1144_v18, 1 }
  0xad   :  { %776 = vmatpush.bf16.msrb.mxu2 %v1363_v11 }
  0xae   :  { %478 = vmatmul.bf16.vlgmr.msrb.gmra.mxu1 %v166_v3 }
  0xaf   :  { %847 = vmatpush.bf16.msrb.mxu1 %v1375_v34 }
  0xb0   :  { %663 = vmatpush.bf16.msrb.mxu3 %v1160_v25 }
  0xb1   :  { %777 = vmatpush.bf16.msrb.mxu2 %v1362_v13 }
  0xb3   :  { %848 = vmatpush.bf16.msrb.mxu1 %v1374_v35 }
  0xb4   :  { %664 = vmatpush.bf16.msrb.mxu3 %v1152_v31 }
  0xb5   :  { %778 = vmatpush.bf16.msrb.mxu2 %v1361_v14 }
  0xb7   :  { %849 = vmatpush.bf16.msrb.mxu1 %v1373_v36 }
  0xbb   :  { %850 = vmatpush.bf16.msrb.mxu1 %v1372_v37 }
  0xbf   :  { %851 = vmatpush.bf16.msrb.mxu1 %v1371_v38 }
 0x11a   :  { %v427_v47 = vpop.f32.mrf.mxu3  ;;  %v466_v48 = vpop.f32.mrf.mxu2 }
 0x11b   :  { %v428_v49 = vadd.f32 %v427_v47, %v211_v46  ;;  %v453_v50 = vpop.f32.mrf.mxu1  ;;  %v440_v51 = vpop.f32.mrf.mxu0  ;;  %v467_v61 = vadd.f32 %v466_v48, %v212_v60  ;;  %v799_v48 = vld [vmem:[%s1946_s6 + $0x4] ss:$0 sm:$0xff]  ;;  %s1380_s6 = smov 125  }
 0x11d   :  { %v441_v52 = vadd.f32 %v440_v51, %v428_v49  ;;  %v858_v49 = vld [vmem:[%s1950_s7] sm:$0xff]  ;;  %s1381_s7 = smov 127  }
 0x11e   :  { %v868_v8 = vperm.slane %v858_v49, 6 }
 0x11f   :  { %v454_v53 = vadd.f32 %v453_v50, %v441_v52  ;;  %v898_v52 = vperm.slane %v858_v49, 3 }
 0x121   :  { %v496_v54 = vmax.f32 %v454_v53, 0.0  ;;  %v872_v53 = vperm.slane %v858_v49, 1 }
 0x122   :  { %v429_v55 = vpop.f32.mrf.mxu3  ;;  %v468_v56 = vpop.f32.mrf.mxu2 }
 0x123   :  { %v498_v57 = vpack.c.bf16 %v496_v54, %v496_v54  ;;  %v455_v58 = vpop.f32.mrf.mxu1  ;;  %v442_v59 = vpop.f32.mrf.mxu0  ;;  %v859_v54 = vperm.slane %v858_v49, 0 }
 0x124   :  { %v911_v59 = vperm.slane %v858_v49, 4 }
 0x125   :  { %639 = vmatmul.bf16.vlgmr.msra.gmra.mxu0 %v498_v57  ;;  %665 = vmatmul.bf16.vlgmr.msrb.gmra.mxu3 %v498_v57 }
 0x12a   :  { %v492_v62 = vpop.f32.mrf.mxu3 }
 0x12b   :  { %v479_v63 = vpop.f32.mrf.mxu1 }
 0x12c   :  { %v480_v0 = vadd.f32 %v479_v63, %v467_v61  ;;  %v885_v63 = vperm.slane %v858_v49, 2 }
 0x12e   :  { %v493_v1 = vadd.f32 %v492_v62, %v480_v0 }
 0x130   :  { %v497_v2 = vmax.f32 %v493_v1, 0.0 }
 0x132   :  { %v499_v3 = vpack.c.bf16 %v497_v2, %v497_v2  ;;  %v494_v4 = vpop.f32.mrf.mxu3 }
 0x133   :  { %v481_v5 = vpop.f32.mrf.mxu1 }
 0x134   :  { %1225 = vmatmul.msk.bf16.vlgmr.msra.gmra.mxu2 %vm627_vm1, %v499_v3  ;;  %1226 = vmatmul.msk.bf16.vlgmr.msra.gmra.mxu1 %vm627_vm1, %v499_v3  ;;  %v865_v5 = vperm.slane %v858_v49, 5 }
 0x1a2   :  { %v640_v15 = vpop.f32.mrf.mxu0 }
 0x1a3   :  { %v641_v26 = vadd.f32 %v640_v15, %v523_v23 }
 0x1a8   :  { %v666_v16 = vpop.f32.mrf.mxu3 }
 0x1a9   :  { %v667_v20 = vadd.f32 %v666_v16, %v524_v19 }
 0x1aa   :  { %v642_v17 = vpop.f32.mrf.mxu0 }
 0x1b0   :  { %v668_v21 = vpop.f32.mrf.mxu3 }
 0x1b1   :  { %v679_v22 = vpop.f32.mrf.mxu1 }
 0x1b2   :  { %v680_v24 = vadd.f32 %v679_v22, %v667_v20 }
 0x1b4   :  { %v684_v25 = vmax.f32 %v680_v24, 0.0 }
 0x1b6   :  { %v686_v27 = vpack.c.bf16 %v684_v25, %v684_v25 }
 0x1b7   :  { %v653_v28 = vpop.f32.mrf.mxu2 }
 0x1b8   :  { %v654_v29 = vadd.f32 %v653_v28, %v641_v26  ;;  %1267 = vmatmul.msk.bf16.vlgmr.msrb.gmra.mxu0 %vm627_vm1, %v686_v27  ;;  %v870_v27 = vperm.slane %v858_v49, 7 }
 0x1b9   :  { %v681_v30 = vpop.f32.mrf.mxu1 }
 0x1ba   :  { %v683_v31 = vmax.f32 %v654_v29, 0.0 }
 0x1bc   :  { %v685_v32 = vpack.c.bf16 %v683_v31, %v683_v31 }
 0x1be   :  { %779 = vmatmul.bf16.vlgmr.msrb.gmra.mxu2 %v685_v32 }
 0x1bf   :  { %v655_v33 = vpop.f32.mrf.mxu2 }
 0x235   :  { %v793_v39 = vpop.f32.mrf.mxu0 }
 0x23d   :  { %v795_v40 = vpop.f32.mrf.mxu0 }
 0x241   :  { %v780_v42 = vpop.f32.mrf.mxu2 }
 0x242   :  { %v781_v43 = vadd.f32 %v780_v42, %v687_v41 }
 0x244   :  { %v794_v44 = vadd.f32 %v793_v39, %v781_v43 }
 0x246   :  { %v797_v45 = vmax.f32 %v794_v44, 0.0 }
 0x248   :  { %v798_v46 = vpack.c.bf16 %v797_v45, %v797_v45 }
 0x249   :  { %v782_v47 = vpop.f32.mrf.mxu2 }
 0x24a   :  { %1288 = vmatmul.msk.bf16.vlgmr.msrb.gmra.mxu1 %vm840_vm2, %v798_v46 }
 0x2c7   :  { %v853_v50 = vpop.f32.mrf.mxu1 }
 0x2c8   :  { %v854_v51 = vadd.f32 %v853_v50, %v799_v48 }
 0x2ca   :  { %v857_v55 = vmax.f32 %v854_v51, 0.0 }
 0x2cc   :  { %v899_v56 = vmul.f32 %v898_v52, %v857_v55  ;;  %v873_v57 = vmul.f32 %v872_v53, %v857_v55  ;;  %v860_v58 = vmul.f32 %v859_v54, %v857_v55  ;;  %v912_v1 = vmul.f32 %v911_v59, %v857_v55 }
 0x2cd   :  { %v886_v2 = vmul.f32 %v885_v63, %v857_v55 }
 0x2ce   :  { %v900_v60 = vsel %vm861_vm3, %v899_v56, 0.0  ;;  %v874_v61 = vsel %vm861_vm3, %v873_v57, 0.0  ;;  %v862_v62 = vsel %vm861_vm3, %v860_v58, 0.0  ;;  %v913_v3 = vsel %vm861_vm3, %v912_v1, 0.0 }
 0x2cf   :  { %v855_v0 = vpop.f32.mrf.mxu1  ;;  %901 = vadd.xlane.f32.xlu1 %v900_v60  ;;  %875 = vadd.xlane.f32.xlu0 %v874_v61  ;;  %v887_v4 = vsel %vm861_vm3, %v886_v2, 0.0 }
 0x2d0   :  { %863 = vadd.xlane.f32.xlu2 %v862_v62 }
 0x2d7   :  { %914 = vadd.xlane.f32.xlu1 %v913_v3  ;;  %888 = vadd.xlane.f32.xlu0 %v887_v4 }
 0x342   :  { %v902_v6 = vpop.xlane.xlu1 %901  ;;  %v876_v7 = vpop.xlane.xlu0 %875 }
 0x343   :  { %v903_v9 = vadd.f32 %v902_v6, %v865_v5  ;;  %v877_v10 = vadd.f32 %v876_v7, %v865_v5  ;;  %v864_v11 = vpop.xlane.xlu2 %863 }
 0x344   :  { %v866_v12 = vadd.f32 %v865_v5, %v864_v11 }
 0x345   :  { %v904_v13 = vmax.f32 %v903_v9, 0.0  ;;  %v878_v14 = vmax.f32 %v877_v10, 0.0 }
 0x346   :  { %v867_v15 = vmax.f32 %v866_v12, 0.0 }
 0x347   :  { %v905_v16 = vmul.f32 %v904_v13, %v868_v8  ;;  %v879_v17 = vmul.f32 %v878_v14, %v868_v8 }
 0x348   :  { %v869_v18 = vmul.f32 %v868_v8, %v867_v15 }
 0x349   :  { %907 = vrot.lane.b32.xlu1 %v905_v16, %s1380_s6  ;;  %881 = vrot.lane.b32.xlu2 %v879_v17, %s1381_s7 }
 0x34a   :  { %v915_v19 = vpop.xlane.xlu1 %914  ;;  %v889_v20 = vpop.xlane.xlu0 %888  ;;  %v871_v29 = vadd.f32 %v870_v27, %v869_v18 }
 0x34b   :  { %v916_v21 = vadd.f32 %v915_v19, %v865_v5  ;;  %v890_v22 = vadd.f32 %v889_v20, %v865_v5 }
 0x34d   :  { %v917_v23 = vmax.f32 %v916_v21, 0.0  ;;  %v891_v24 = vmax.f32 %v890_v22, 0.0 }
 0x34f   :  { %v918_v25 = vmul.f32 %v917_v23, %v868_v8  ;;  %v892_v26 = vmul.f32 %v891_v24, %v868_v8 }
 0x351   :  { %894 = vrot.lane.b32.xlu0 %v892_v26, %s1382_s19  ;;  %920 = vrot.lane.b32.xlu2 %v918_v25, %s1383_s20 }
 0x3a3   :  { %v882_v28 = vpop.permute.xlu2 %881 }
 0x3a4   :  { %v884_v30 = vadd.f32 %v882_v28, %v871_v29 }
 0x3ab   :  { %v921_v35 = vpop.permute.xlu2 %920 }
 0x3bb   :  { %v908_v33 = vpop.permute.xlu1 %907 }
 0x3c3   :  { %v895_v31 = vpop.permute.xlu0 %894 }
 0x3c4   :  { %v897_v32 = vadd.f32 %v895_v31, %v884_v30 }
 0x3c6   :  { %v910_v34 = vadd.f32 %v908_v33, %v897_v32 }
 0x3c8   :  { %v923_v36 = vadd.f32 %v921_v35, %v910_v34 }
 0x3ca   :  { %925 = vst.msk [vmem:[%s1951_s8] sm:$0xff] %vm924_vm4, %v923_v36 }

</bundles_post_ra>
